<compile_context>
chip_gen: v7x
topology: tpu7x:2x2x1
jax: 0.10.0
libtpu: 0.0.40
codegen_flags: <defaults>
</compile_context>

<pallas_src>
from functools import partial

import jax
import jax.numpy as jnp
from jax.experimental import pallas as pl
from jax.experimental.pallas import tpu as pltpu

EPS = 1e-5


def _round_up(x, m):
    return (x + m - 1) // m * m


def _vmem_limit_bytes():
    # Raise v5e's 16 MiB scoped default, keep headroom on v7x's 64 MiB physical.
    try:
        cap = pltpu.get_tpu_info().vmem_capacity_bytes
    except Exception:
        cap = 64 * 1024 * 1024
    return min(100 * 1024 * 1024, int(cap) * 3 // 4)


def _make_conv_stats_kernel(k, th, wo, ho, cout, mask_rows):
    """Pass 1: fused im2col + conv-as-matmul + per-tile BN partial sums."""

    def kernel(xa_ref, xb_ref, w_ref, y_ref, stats_ref):
        # xa/xb: (1, th, Wp, Cinp) bf16 -- current input row block + next (halo).
        # w_ref: (K*K, Cinp, Cout) bf16, grid-invariant (revisited block).
        # y_ref: (th*Wo, Cout) bf16.  stats_ref: (1, 2, Cout) f32.
        slab = jnp.concatenate([xa_ref[0], xb_ref[0]], axis=0)   # (2*th, Wp, Cinp)
        rows = th * wo
        acc = jnp.zeros((rows, cout), jnp.float32)
        for kh in range(k):
            for kw in range(k):
                xs = slab[kh:kh + th, kw:kw + wo, :]              # (th, Wo, Cinp)
                xs = xs.reshape(rows, xs.shape[-1])               # VMEM-only relayout
                acc = acc + jnp.dot(xs, w_ref[kh * k + kw],
                                    preferred_element_type=jnp.float32)
        if mask_rows:
            # Zero the padded output rows of the last row tile so they do not
            # contaminate the batch statistics (we divide by the true M).
            i = pl.program_id(1)
            limit = jnp.minimum(ho - i * th, th) * wo
            ridx = jax.lax.broadcasted_iota(jnp.int32, (rows, 1), 0)
            acc = jnp.where(ridx < limit, acc, 0.0)
        y_ref[...] = acc.astype(y_ref.dtype)                      # bf16 y store
        stats_ref[0, 0:1, :] = jnp.sum(acc, axis=0, keepdims=True)        # sum
        stats_ref[0, 1:2, :] = jnp.sum(acc * acc, axis=0, keepdims=True)  # sum of sq

    return kernel


def _bn_relu_kernel(y_ref, scale_ref, shift_ref, o_ref):
    # y_ref/o_ref: (tile2, Cout) bf16 (aliased HBM buffer); scale/shift: (1, Cout) f32.
    y = y_ref[...].astype(jnp.float32)
    o_ref[...] = jnp.maximum(y * scale_ref[...] + shift_ref[...], 0.0).astype(o_ref.dtype)


@partial(jax.jit, static_argnames=("stride", "padding", "tile_h"))
def conv_block(x, weight, gamma, beta, *, stride=1, padding=0, tile_h=None):
    """x: (N, Cin, H, W); weight: (Cout, Cin, K, K). Returns NCHW float32."""
    n, cin, h, w = x.shape
    cout, cin_w, k, k2 = weight.shape
    assert cin == cin_w and k == k2
    # TODO(synk): strided fused conv (stride > 1) not implemented in the Pallas path.
    assert stride == 1, "fused Pallas path implements stride=1 only"

    ho = h + 2 * padding - k + 1
    wo = w + 2 * padding - k + 1
    assert ho >= 1 and wo >= 1

    # Output-row tile (multiple of 8 so th*Wo is sublane-aligned; >= K so the
    # two-block halo covers every KxK window).  Keep slabs modest for v7x VMEM.
    if tile_h is None:
        tile_h = max(8, min(_round_up(ho, 8), _round_up(max(1, 1024 // max(wo, 1)), 8)))
    th = _round_up(max(tile_h, 8, k), 8)
    nh = -(-ho // th)                         # row tiles per image

    cinp = _round_up(cin, 16)                 # bf16-sublane-friendly contraction dim
    wp = w + 2 * padding
    hpad = (nh + 1) * th                      # extra block = halo source for last tile

    # Channels-last, spatially padded, channel-padded, bf16 (one XLA pass over x).
    x_nhwc = jnp.transpose(x, (0, 2, 3, 1)).astype(jnp.bfloat16)
    x_pad = jnp.zeros((n, hpad, wp, cinp), jnp.bfloat16)
    x_pad = x_pad.at[:, padding:padding + h, padding:padding + w, :cin].set(x_nhwc)

    # weight -> (K*K, Cinp, Cout) bf16 with layout [kh*K + kw, c, o].
    w_r = jnp.transpose(weight, (2, 3, 1, 0)).reshape(k * k, cin, cout).astype(jnp.bfloat16)
    w_p = jnp.zeros((k * k, cinp, cout), jnp.bfloat16).at[:, :cin, :].set(w_r)

    rows = th * wo
    t = n * nh
    m_flat = t * rows
    vmem_limit = _vmem_limit_bytes()

    # ---- Pass 1: fused im2col + matmul + per-tile BN partials ----
    kernel = _make_conv_stats_kernel(k, th, wo, ho, cout, mask_rows=(nh * th != ho))
    y, partial_stats = pl.pallas_call(
        kernel,
        out_shape=(
            jax.ShapeDtypeStruct((m_flat, cout), jnp.bfloat16),   # bf16 y intermediate
            jax.ShapeDtypeStruct((t, 2, cout), jnp.float32),      # per-tile (sum, sumsq)
        ),
        grid=(n, nh),
        in_specs=[
            pl.BlockSpec((1, th, wp, cinp), lambda b, i: (b, i, 0, 0)),      # row block
            pl.BlockSpec((1, th, wp, cinp), lambda b, i: (b, i + 1, 0, 0)),  # halo block
            pl.BlockSpec((k * k, cinp, cout), lambda b, i: (0, 0, 0)),       # weight (resident)
        ],
        out_specs=(
            pl.BlockSpec((rows, cout), lambda b, i: (b * nh + i, 0)),
            pl.BlockSpec((1, 2, cout), lambda b, i: (b * nh + i, 0, 0)),
        ),
        compiler_params=pltpu.CompilerParams(
            dimension_semantics=("parallel", "parallel"),
            vmem_limit_bytes=vmem_limit),
    )(x_pad, x_pad, w_p)

    # ---- Finalize: Chan-style merge of per-tile (count, mean, M2) -> scale/shift ----
    counts = (jnp.minimum(ho - jnp.arange(nh) * th, th) * wo).astype(jnp.float32)  # (nh,)
    cnt = jnp.tile(counts, n)[:, None]                                             # (t, 1)
    s1 = partial_stats[:, 0, :]
    s2 = partial_stats[:, 1, :]
    m_true = float(n * ho * wo)
    mean_t = s1 / cnt
    m2_t = jnp.maximum(s2 - s1 * mean_t, 0.0)          # per-tile centered sum of squares
    mean = jnp.sum(s1, axis=0) / m_true
    m2 = jnp.sum(m2_t, axis=0) + jnp.sum(cnt * (mean_t - mean[None, :]) ** 2, axis=0)
    var = m2 / m_true                                  # biased variance (BatchNorm train)
    scale = gamma.astype(jnp.float32) * jax.lax.rsqrt(var + EPS)
    shift = beta.astype(jnp.float32) - mean * scale
    scale2d = scale.reshape(1, cout)
    shift2d = shift.reshape(1, cout)

    # ---- Pass 2: y*scale + shift, ReLU (bf16 in / bf16 out, in-place on y) ----
    d = 1
    max_rows2 = max(rows, 8192)                        # decoupled, larger pass-2 tile
    for cand in range(t, 0, -1):
        if t % cand == 0 and cand * rows <= max_rows2:
            d = cand
            break
    tile2 = d * rows

    out2d = pl.pallas_call(
        _bn_relu_kernel,
        out_shape=jax.ShapeDtypeStruct((m_flat, cout), jnp.bfloat16),
        grid=(m_flat // tile2,),
        in_specs=[
            pl.BlockSpec((tile2, cout), lambda i: (i, 0)),
            pl.BlockSpec((1, cout), lambda i: (0, 0)),
            pl.BlockSpec((1, cout), lambda i: (0, 0)),
        ],
        out_specs=pl.BlockSpec((tile2, cout), lambda i: (i, 0)),
        input_output_aliases={0: 0},                   # reuse y's HBM buffer
        compiler_params=pltpu.CompilerParams(
            dimension_semantics=("parallel",),
            vmem_limit_bytes=vmem_limit),
    )(y, scale2d, shift2d)

    out_nhwc = out2d.reshape(n, nh * th, wo, cout)[:, :ho]
    # TODO(synk): skip this NCHW transpose / f32 cast for channels-last bf16 consumers.
    return jnp.transpose(out_nhwc, (0, 3, 1, 2)).astype(jnp.float32)


def conv_block_reference(x, weight, gamma, beta, *, stride=1, padding=0,
                         matmul_dtype=jnp.float32, y_round_dtype=None):
    """Pure-JAX reference of Conv2d(no bias) + BatchNorm2d(train) + ReLU."""
    y = jax.lax.conv_general_dilated(
        x.astype(matmul_dtype), weight.astype(matmul_dtype),
        window_strides=(stride, stride),
        padding=[(padding, padding), (padding, padding)],
        dimension_numbers=("NCHW", "OIHW", "NCHW"),
        preferred_element_type=jnp.float32)
    if y_round_dtype is not None:
        y = y.astype(y_round_dtype).astype(jnp.float32)
    mean = jnp.mean(y, axis=(0, 2, 3), keepdims=True)
    var = jnp.mean((y - mean) ** 2, axis=(0, 2, 3), keepdims=True)
    y_hat = (y - mean) * jax.lax.rsqrt(var + EPS)
    out = y_hat * gamma.reshape(1, -1, 1, 1) + beta.reshape(1, -1, 1, 1)
    return jnp.maximum(out, 0.0)


if __name__ == "__main__":
    # ConvBlock(in_dim=4, out_dim=8, kernel_size=3, stride=1, padding=1)
    # applied to a (2, 4, 16, 16) NCHW input.
    N, CIN, H, W = 2, 4, 16, 16
    COUT, K, STRIDE, PAD = 8, 3, 1, 1

    key = jax.random.PRNGKey(0)
    kx, kw = jax.random.split(key)
    x = jax.random.normal(kx, (N, CIN, H, W), dtype=jnp.float32)
    weight = jax.random.normal(kw, (COUT, CIN, K, K), dtype=jnp.float32) * 0.1
    gamma = jnp.ones((COUT,), dtype=jnp.float32)   # BatchNorm2d default affine
    beta = jnp.zeros((COUT,), dtype=jnp.float32)

    # tile_h=8 -> 2 row tiles per image, grid (2, 2): exercises the halo slab,
    # the per-tile partial-stats merge, and the pass-2 retiling path.
    out = conv_block(x, weight, gamma, beta, stride=STRIDE, padding=PAD, tile_h=8)
    out = jax.block_until_ready(out)
    assert out.shape == (N, COUT, H, W), out.shape
    assert bool(jnp.all(out >= 0.0)), "ReLU output must be non-negative"

    # Structural check vs a reference that also uses bf16 matmul inputs and a
    # bf16-rounded y (matches the kernel's bf16 y store).  Max-abs is loose
    # because independent f32 accumulation orders can flip bf16 rounding of y.
    ref_b = jax.block_until_ready(conv_block_reference(
        x, weight, gamma, beta, stride=STRIDE, padding=PAD,
        matmul_dtype=jnp.bfloat16, y_round_dtype=jnp.bfloat16))
    diff_b = jnp.abs(out - ref_b)
    err_b_max = float(jnp.max(diff_b))
    err_b_mean = float(jnp.mean(diff_b))
    assert err_b_max < 4e-2, f"max abs err vs matched bf16 reference {err_b_max}"
    assert err_b_mean < 3e-3, f"mean abs err vs matched bf16 reference {err_b_mean}"

    # Looser sanity check vs the full-f32 reference (bf16 matmul inputs and a
    # bf16 y intermediate by design, per perf guidance).
    ref_f = jax.block_until_ready(conv_block_reference(
        x, weight, gamma, beta, stride=STRIDE, padding=PAD,
        matmul_dtype=jnp.float32))
    err_f = float(jnp.max(jnp.abs(out - ref_f)))
    assert err_f < 8e-2, f"max abs err vs f32 reference {err_f}"

    print("KERNEL_OK")
</pallas_src>

<mosaic_0001>
module attributes {stable_mosaic.version = 11 : i64} {
  func.func @_bn_relu_kernel(%arg0: i32, %arg1: memref<512x8xbf16, #tpu.memory_space<vmem>>, %arg2: memref<1x8xf32, #tpu.memory_space<vmem>>, %arg3: memref<1x8xf32, #tpu.memory_space<vmem>>, %arg4: memref<512x8xbf16, #tpu.memory_space<vmem>>) attributes {dimension_semantics = [#tpu.dimension_semantics<parallel>], iteration_bounds = array<i64: 1>, scalar_prefetch = 0 : i64, scratch_operands = 0 : i64, tpu.core_type = #tpu.core_type<tc>, window_params = [{transform_indices = @transform_0, window_bounds = array<i64: 512, 8>}, {pipeline_mode = #tpu.pipeline_mode<synchronous>, transform_indices = @transform_1, window_bounds = array<i64: 1, 8>}, {pipeline_mode = #tpu.pipeline_mode<synchronous>, transform_indices = @transform_2, window_bounds = array<i64: 1, 8>}, {transform_indices = @transform_3, window_bounds = array<i64: 512, 8>}]} {
    %c0 = arith.constant 0 : index
    %c0_0 = arith.constant 0 : index
    %0 = vector.load %arg1[%c0, %c0_0] : memref<512x8xbf16, #tpu.memory_space<vmem>>, vector<512x8xbf16>
    %1 = arith.extf %0 : vector<512x8xbf16> to vector<512x8xf32>
    %c0_1 = arith.constant 0 : index
    %c0_2 = arith.constant 0 : index
    %2 = vector.load %arg2[%c0_1, %c0_2] : memref<1x8xf32, #tpu.memory_space<vmem>>, vector<1x8xf32>
    %3 = vector.broadcast %2 : vector<1x8xf32> to vector<512x8xf32>
    %4 = arith.mulf %1, %3 : vector<512x8xf32>
    %c0_3 = arith.constant 0 : index
    %c0_4 = arith.constant 0 : index
    %5 = vector.load %arg3[%c0_3, %c0_4] : memref<1x8xf32, #tpu.memory_space<vmem>>, vector<1x8xf32>
    %6 = vector.broadcast %5 : vector<1x8xf32> to vector<512x8xf32>
    %7 = arith.addf %4, %6 : vector<512x8xf32>
    %cst = arith.constant 0.000000e+00 : f32
    %8 = vector.broadcast %cst : f32 to vector<512x8xf32>
    %9 = arith.maximumf %7, %8 : vector<512x8xf32>
    %10 = arith.truncf %9 : vector<512x8xf32> to vector<512x8xbf16>
    %c0_5 = arith.constant 0 : index
    %c0_6 = arith.constant 0 : index
    %11 = vector.load %arg4[%c0_5, %c0_6] : memref<512x8xbf16, #tpu.memory_space<vmem>>, vector<512x8xbf16>
    tpu.vector_store %arg4[%c0_5, %c0_6], %10 {strides = array<i32>} : memref<512x8xbf16, #tpu.memory_space<vmem>>, vector<512x8xbf16>,
    return
  }
  func.func @transform_0(%arg0: i32) -> (i32, i32) {
    %c0_i32 = arith.constant 0 : i32
    %c0_i32_0 = arith.constant 0 : i32
    return %arg0, %c0_i32 : i32, i32
  }
  func.func @transform_1(%arg0: i32) -> (i32, i32) {
    %c0_i32 = arith.constant 0 : i32
    %c0_i32_0 = arith.constant 0 : i32
    %c0_i32_1 = arith.constant 0 : i32
    return %c0_i32, %c0_i32_0 : i32, i32
  }
  func.func @transform_2(%arg0: i32) -> (i32, i32) {
    %c0_i32 = arith.constant 0 : i32
    %c0_i32_0 = arith.constant 0 : i32
    %c0_i32_1 = arith.constant 0 : i32
    return %c0_i32, %c0_i32_0 : i32, i32
  }
  func.func @transform_3(%arg0: i32) -> (i32, i32) {
    %c0_i32 = arith.constant 0 : i32
    %c0_i32_0 = arith.constant 0 : i32
    return %arg0, %c0_i32 : i32, i32
  }
}

module attributes {stable_mosaic.version = 11 : i64} {
  func.func @kernel(%arg0: i32, %arg1: i32, %arg2: memref<1x8x18x16xbf16, #tpu.memory_space<vmem>>, %arg3: memref<1x8x18x16xbf16, #tpu.memory_space<vmem>>, %arg4: memref<9x16x8xbf16, #tpu.memory_space<vmem>>, %arg5: memref<128x8xbf16, #tpu.memory_space<vmem>>, %arg6: memref<1x2x8xf32, #tpu.memory_space<vmem>>) attributes {dimension_semantics = [#tpu.dimension_semantics<parallel>, #tpu.dimension_semantics<parallel>], iteration_bounds = array<i64: 2, 2>, scalar_prefetch = 0 : i64, scratch_operands = 0 : i64, tpu.core_type = #tpu.core_type<tc>, window_params = [{transform_indices = @transform_0, window_bounds = array<i64: 1, 8, 18, 16>}, {transform_indices = @transform_1, window_bounds = array<i64: 1, 8, 18, 16>}, {pipeline_mode = #tpu.pipeline_mode<synchronous>, transform_indices = @transform_2, window_bounds = array<i64: 9, 16, 8>}, {transform_indices = @transform_3, window_bounds = array<i64: 128, 8>}, {transform_indices = @transform_4, window_bounds = array<i64: 1, 2, 8>}]} {
    %c0 = arith.constant 0 : index
    %c0_0 = arith.constant 0 : index
    %c0_1 = arith.constant 0 : index
    %c0_2 = arith.constant 0 : index
    %0 = vector.load %arg2[%c0, %c0_0, %c0_1, %c0_2] : memref<1x8x18x16xbf16, #tpu.memory_space<vmem>>, vector<1x8x18x16xbf16>
    %1 = vector.shape_cast %0 : vector<1x8x18x16xbf16> to vector<8x18x16xbf16>
    %c0_3 = arith.constant 0 : index
    %c0_4 = arith.constant 0 : index
    %c0_5 = arith.constant 0 : index
    %c0_6 = arith.constant 0 : index
    %2 = vector.load %arg3[%c0_3, %c0_4, %c0_5, %c0_6] : memref<1x8x18x16xbf16, #tpu.memory_space<vmem>>, vector<1x8x18x16xbf16>
    %3 = vector.shape_cast %2 : vector<1x8x18x16xbf16> to vector<8x18x16xbf16>
    %4 = tpu.concatenate %1, %3 in 0 : vector<8x18x16xbf16>, vector<8x18x16xbf16> -> vector<16x18x16xbf16>
    %cst = arith.constant 0.000000e+00 : f32
    %5 = vector.broadcast %cst : f32 to vector<128x8xf32>
    %6 = vector.extract_strided_slice %4 {offsets = [0, 0, 0], sizes = [8, 16, 16], strides = [1, 1, 1]} : vector<16x18x16xbf16> to vector<8x16x16xbf16>
    %7 = vector.shape_cast %6 : vector<8x16x16xbf16> to vector<128x16xbf16>
    %c0_7 = arith.constant 0 : index
    %c0_8 = arith.constant 0 : index
    %c0_9 = arith.constant 0 : index
    %8 = vector.load %arg4[%c0_7, %c0_8, %c0_9] : memref<9x16x8xbf16, #tpu.memory_space<vmem>>, vector<1x16x8xbf16>
    %9 = vector.shape_cast %8 : vector<1x16x8xbf16> to vector<16x8xbf16>
    %cst_10 = arith.constant dense<0.000000e+00> : vector<128x8xf32>
    %10 = tpu.matmul %7, %9, %cst_10 {dimension_numbers = #tpu.dot_dimension_numbers<[1], [0], [0], [1], [0, 0, 1, 1], [], []>} : vector<128x16xbf16>, vector<16x8xbf16>, vector<128x8xf32> -> vector<128x8xf32>
    %11 = arith.addf %5, %10 : vector<128x8xf32>
    %12 = vector.extract_strided_slice %4 {offsets = [0, 1, 0], sizes = [8, 16, 16], strides = [1, 1, 1]} : vector<16x18x16xbf16> to vector<8x16x16xbf16>
    %13 = vector.shape_cast %12 : vector<8x16x16xbf16> to vector<128x16xbf16>
    %c1 = arith.constant 1 : index
    %c0_11 = arith.constant 0 : index
    %c0_12 = arith.constant 0 : index
    %14 = vector.load %arg4[%c1, %c0_11, %c0_12] : memref<9x16x8xbf16, #tpu.memory_space<vmem>>, vector<1x16x8xbf16>
    %15 = vector.shape_cast %14 : vector<1x16x8xbf16> to vector<16x8xbf16>
    %cst_13 = arith.constant dense<0.000000e+00> : vector<128x8xf32>
    %16 = tpu.matmul %13, %15, %cst_13 {dimension_numbers = #tpu.dot_dimension_numbers<[1], [0], [0], [1], [0, 0, 1, 1], [], []>} : vector<128x16xbf16>, vector<16x8xbf16>, vector<128x8xf32> -> vector<128x8xf32>
    %17 = arith.addf %11, %16 : vector<128x8xf32>
    %18 = vector.extract_strided_slice %4 {offsets = [0, 2, 0], sizes = [8, 16, 16], strides = [1, 1, 1]} : vector<16x18x16xbf16> to vector<8x16x16xbf16>
    %19 = vector.shape_cast %18 : vector<8x16x16xbf16> to vector<128x16xbf16>
    %c2 = arith.constant 2 : index
    %c0_14 = arith.constant 0 : index
    %c0_15 = arith.constant 0 : index
    %20 = vector.load %arg4[%c2, %c0_14, %c0_15] : memref<9x16x8xbf16, #tpu.memory_space<vmem>>, vector<1x16x8xbf16>
    %21 = vector.shape_cast %20 : vector<1x16x8xbf16> to vector<16x8xbf16>
    %cst_16 = arith.constant dense<0.000000e+00> : vector<128x8xf32>
    %22 = tpu.matmul %19, %21, %cst_16 {dimension_numbers = #tpu.dot_dimension_numbers<[1], [0], [0], [1], [0, 0, 1, 1], [], []>} : vector<128x16xbf16>, vector<16x8xbf16>, vector<128x8xf32> -> vector<128x8xf32>
    %23 = arith.addf %17, %22 : vector<128x8xf32>
    %24 = vector.extract_strided_slice %4 {offsets = [1, 0, 0], sizes = [8, 16, 16], strides = [1, 1, 1]} : vector<16x18x16xbf16> to vector<8x16x16xbf16>
    %25 = vector.shape_cast %24 : vector<8x16x16xbf16> to vector<128x16xbf16>
    %c3 = arith.constant 3 : index
    %c0_17 = arith.constant 0 : index
    %c0_18 = arith.constant 0 : index
    %26 = vector.load %arg4[%c3, %c0_17, %c0_18] : memref<9x16x8xbf16, #tpu.memory_space<vmem>>, vector<1x16x8xbf16>
    %27 = vector.shape_cast %26 : vector<1x16x8xbf16> to vector<16x8xbf16>
    %cst_19 = arith.constant dense<0.000000e+00> : vector<128x8xf32>
    %28 = tpu.matmul %25, %27, %cst_19 {dimension_numbers = #tpu.dot_dimension_numbers<[1], [0], [0], [1], [0, 0, 1, 1], [], []>} : vector<128x16xbf16>, vector<16x8xbf16>, vector<128x8xf32> -> vector<128x8xf32>
    %29 = arith.addf %23, %28 : vector<128x8xf32>
    %30 = vector.extract_strided_slice %4 {offsets = [1, 1, 0], sizes = [8, 16, 16], strides = [1, 1, 1]} : vector<16x18x16xbf16> to vector<8x16x16xbf16>
    %31 = vector.shape_cast %30 : vector<8x16x16xbf16> to vector<128x16xbf16>
    %c4 = arith.constant 4 : index
    %c0_20 = arith.constant 0 : index
    %c0_21 = arith.constant 0 : index
    %32 = vector.load %arg4[%c4, %c0_20, %c0_21] : memref<9x16x8xbf16, #tpu.memory_space<vmem>>, vector<1x16x8xbf16>
    %33 = vector.shape_cast %32 : vector<1x16x8xbf16> to vector<16x8xbf16>
    %cst_22 = arith.constant dense<0.000000e+00> : vector<128x8xf32>
    %34 = tpu.matmul %31, %33, %cst_22 {dimension_numbers = #tpu.dot_dimension_numbers<[1], [0], [0], [1], [0, 0, 1, 1], [], []>} : vector<128x16xbf16>, vector<16x8xbf16>, vector<128x8xf32> -> vector<128x8xf32>
    %35 = arith.addf %29, %34 : vector<128x8xf32>
    %36 = vector.extract_strided_slice %4 {offsets = [1, 2, 0], sizes = [8, 16, 16], strides = [1, 1, 1]} : vector<16x18x16xbf16> to vector<8x16x16xbf16>
    %37 = vector.shape_cast %36 : vector<8x16x16xbf16> to vector<128x16xbf16>
    %c5 = arith.constant 5 : index
    %c0_23 = arith.constant 0 : index
    %c0_24 = arith.constant 0 : index
    %38 = vector.load %arg4[%c5, %c0_23, %c0_24] : memref<9x16x8xbf16, #tpu.memory_space<vmem>>, vector<1x16x8xbf16>
    %39 = vector.shape_cast %38 : vector<1x16x8xbf16> to vector<16x8xbf16>
    %cst_25 = arith.constant dense<0.000000e+00> : vector<128x8xf32>
    %40 = tpu.matmul %37, %39, %cst_25 {dimension_numbers = #tpu.dot_dimension_numbers<[1], [0], [0], [1], [0, 0, 1, 1], [], []>} : vector<128x16xbf16>, vector<16x8xbf16>, vector<128x8xf32> -> vector<128x8xf32>
    %41 = arith.addf %35, %40 : vector<128x8xf32>
    %42 = vector.extract_strided_slice %4 {offsets = [2, 0, 0], sizes = [8, 16, 16], strides = [1, 1, 1]} : vector<16x18x16xbf16> to vector<8x16x16xbf16>
    %43 = vector.shape_cast %42 : vector<8x16x16xbf16> to vector<128x16xbf16>
    %c6 = arith.constant 6 : index
    %c0_26 = arith.constant 0 : index
    %c0_27 = arith.constant 0 : index
    %44 = vector.load %arg4[%c6, %c0_26, %c0_27] : memref<9x16x8xbf16, #tpu.memory_space<vmem>>, vector<1x16x8xbf16>
    %45 = vector.shape_cast %44 : vector<1x16x8xbf16> to vector<16x8xbf16>
    %cst_28 = arith.constant dense<0.000000e+00> : vector<128x8xf32>
    %46 = tpu.matmul %43, %45, %cst_28 {dimension_numbers = #tpu.dot_dimension_numbers<[1], [0], [0], [1], [0, 0, 1, 1], [], []>} : vector<128x16xbf16>, vector<16x8xbf16>, vector<128x8xf32> -> vector<128x8xf32>
    %47 = arith.addf %41, %46 : vector<128x8xf32>
    %48 = vector.extract_strided_slice %4 {offsets = [2, 1, 0], sizes = [8, 16, 16], strides = [1, 1, 1]} : vector<16x18x16xbf16> to vector<8x16x16xbf16>
    %49 = vector.shape_cast %48 : vector<8x16x16xbf16> to vector<128x16xbf16>
    %c7 = arith.constant 7 : index
    %c0_29 = arith.constant 0 : index
    %c0_30 = arith.constant 0 : index
    %50 = vector.load %arg4[%c7, %c0_29, %c0_30] : memref<9x16x8xbf16, #tpu.memory_space<vmem>>, vector<1x16x8xbf16>
    %51 = vector.shape_cast %50 : vector<1x16x8xbf16> to vector<16x8xbf16>
    %cst_31 = arith.constant dense<0.000000e+00> : vector<128x8xf32>
    %52 = tpu.matmul %49, %51, %cst_31 {dimension_numbers = #tpu.dot_dimension_numbers<[1], [0], [0], [1], [0, 0, 1, 1], [], []>} : vector<128x16xbf16>, vector<16x8xbf16>, vector<128x8xf32> -> vector<128x8xf32>
    %53 = arith.addf %47, %52 : vector<128x8xf32>
    %54 = vector.extract_strided_slice %4 {offsets = [2, 2, 0], sizes = [8, 16, 16], strides = [1, 1, 1]} : vector<16x18x16xbf16> to vector<8x16x16xbf16>
    %55 = vector.shape_cast %54 : vector<8x16x16xbf16> to vector<128x16xbf16>
    %c8 = arith.constant 8 : index
    %c0_32 = arith.constant 0 : index
    %c0_33 = arith.constant 0 : index
    %56 = vector.load %arg4[%c8, %c0_32, %c0_33] : memref<9x16x8xbf16, #tpu.memory_space<vmem>>, vector<1x16x8xbf16>
    %57 = vector.shape_cast %56 : vector<1x16x8xbf16> to vector<16x8xbf16>
    %cst_34 = arith.constant dense<0.000000e+00> : vector<128x8xf32>
    %58 = tpu.matmul %55, %57, %cst_34 {dimension_numbers = #tpu.dot_dimension_numbers<[1], [0], [0], [1], [0, 0, 1, 1], [], []>} : vector<128x16xbf16>, vector<16x8xbf16>, vector<128x8xf32> -> vector<128x8xf32>
    %59 = arith.addf %53, %58 : vector<128x8xf32>
    %60 = arith.truncf %59 : vector<128x8xf32> to vector<128x8xbf16>
    %c0_35 = arith.constant 0 : index
    %c0_36 = arith.constant 0 : index
    %61 = vector.load %arg5[%c0_35, %c0_36] : memref<128x8xbf16, #tpu.memory_space<vmem>>, vector<128x8xbf16>
    tpu.vector_store %arg5[%c0_35, %c0_36], %60 {strides = array<i32>} : memref<128x8xbf16, #tpu.memory_space<vmem>>, vector<128x8xbf16>,
    %cst_37 = arith.constant dense<0.000000e+00> : vector<8xf32>
    %62 = vector.multi_reduction <add>, %59, %cst_37 [0] : vector<128x8xf32> to vector<8xf32>
    %63 = vector.shape_cast %62 : vector<8xf32> to vector<1x8xf32>
    %c0_38 = arith.constant 0 : index
    %c0_39 = arith.constant 0 : index
    %c0_40 = arith.constant 0 : index
    %64 = vector.load %arg6[%c0_38, %c0_39, %c0_40] : memref<1x2x8xf32, #tpu.memory_space<vmem>>, vector<1x1x8xf32>
    %65 = vector.shape_cast %64 : vector<1x1x8xf32> to vector<1x8xf32>
    %66 = vector.shape_cast %63 : vector<1x8xf32> to vector<1x1x8xf32>
    tpu.vector_store %arg6[%c0_38, %c0_39, %c0_40], %66 {strides = array<i32>} : memref<1x2x8xf32, #tpu.memory_space<vmem>>, vector<1x1x8xf32>,
    %67 = arith.mulf %59, %59 : vector<128x8xf32>
    %cst_41 = arith.constant dense<0.000000e+00> : vector<8xf32>
    %68 = vector.multi_reduction <add>, %67, %cst_41 [0] : vector<128x8xf32> to vector<8xf32>
    %69 = vector.shape_cast %68 : vector<8xf32> to vector<1x8xf32>
    %c0_42 = arith.constant 0 : index
    %c1_43 = arith.constant 1 : index
    %c0_44 = arith.constant 0 : index
    %70 = vector.load %arg6[%c0_42, %c1_43, %c0_44] : memref<1x2x8xf32, #tpu.memory_space<vmem>>, vector<1x1x8xf32>
    %71 = vector.shape_cast %70 : vector<1x1x8xf32> to vector<1x8xf32>
    %72 = vector.shape_cast %69 : vector<1x8xf32> to vector<1x1x8xf32>
    tpu.vector_store %arg6[%c0_42, %c1_43, %c0_44], %72 {strides = array<i32>} : memref<1x2x8xf32, #tpu.memory_space<vmem>>, vector<1x1x8xf32>,
    return
  }
  func.func @transform_0(%arg0: i32, %arg1: i32) -> (i32, i32, i32, i32) {
    %c0_i32 = arith.constant 0 : i32
    %c0_i32_0 = arith.constant 0 : i32
    %c0_i32_1 = arith.constant 0 : i32
    return %arg0, %arg1, %c0_i32, %c0_i32_0 : i32, i32, i32, i32
  }
  func.func @transform_1(%arg0: i32, %arg1: i32) -> (i32, i32, i32, i32) {
    %c1_i32 = arith.constant 1 : i32
    %0 = arith.addi %arg1, %c1_i32 : i32
    %c0_i32 = arith.constant 0 : i32
    %c0_i32_0 = arith.constant 0 : i32
    %c0_i32_1 = arith.constant 0 : i32
    return %arg0, %0, %c0_i32, %c0_i32_0 : i32, i32, i32, i32
  }
  func.func @transform_2(%arg0: i32, %arg1: i32) -> (i32, i32, i32) {
    %c0_i32 = arith.constant 0 : i32
    %c0_i32_0 = arith.constant 0 : i32
    %c0_i32_1 = arith.constant 0 : i32
    %c0_i32_2 = arith.constant 0 : i32
    return %c0_i32, %c0_i32_0, %c0_i32_1 : i32, i32, i32
  }
  func.func @transform_3(%arg0: i32, %arg1: i32) -> (i32, i32) {
    %c2_i32 = arith.constant 2 : i32
    %0 = arith.muli %arg0, %c2_i32 : i32
    %1 = arith.addi %0, %arg1 : i32
    %c0_i32 = arith.constant 0 : i32
    %c0_i32_0 = arith.constant 0 : i32
    return %1, %c0_i32 : i32, i32
  }
  func.func @transform_4(%arg0: i32, %arg1: i32) -> (i32, i32, i32) {
    %c2_i32 = arith.constant 2 : i32
    %0 = arith.muli %arg0, %c2_i32 : i32
    %1 = arith.addi %0, %arg1 : i32
    %c0_i32 = arith.constant 0 : i32
    %c0_i32_0 = arith.constant 0 : i32
    %c0_i32_1 = arith.constant 0 : i32
    return %1, %c0_i32, %c0_i32_0 : i32, i32, i32
  }
}

</mosaic_0001>

<bundles_post_ra>
// kernel: tile.8
= control target key start
LH: loop header
LB: loop body
LE: loop exit
PB: predicated region body
PF: predicated region fallthrough
CT: control target
= control target key end

     0   :  { %s22_s0 = inlined_call_operand.vmem [shape: f32[2], index: 0, kind: input, shape index: {}]   ;;  %s23_s1 = inlined_call_operand.vmem [shape: f32[2,2], index: 1, kind: output, shape index: {}]  }
   0x1   :  { %v4_v0 = vld [vmem:[%s22_s0] ss:$0 sm:$0xff] }
   0x2   :  { %5 = vst [vmem:[%s23_s1] sm:$0x3] %v4_v0 }

// kernel: div.7
= control target key start
LH: loop header
LB: loop body
LE: loop exit
PB: predicated region body
PF: predicated region fallthrough
CT: control target
= control target key end

     0   :  { %vm7_vm0 = vcmask 15360   ;;  %vm13_vm1 = vcmask 31760   ;;  %s39_s0 = inlined_call_operand.vmem [shape: f32[2,2], index: 0, kind: input, shape index: {}]   ;;  %s40_s1 = inlined_call_operand.vmem [shape: f32[4], index: 1, kind: output, shape index: {}]  }
   0x1   :  { %v4_v0 = vld [vmem:[%s39_s0] sm:$0x3]  ;;  %s22_s0 = smov 2  }
   0x2   :  { %5 = vst [vmem:[#allocation1] sm:$0x3] %v4_v0 }
   0x9   :  { %v10_v1 = vld [vmem:[#allocation1 + $0x1] sm:$0x1]   ;;  %v6_v2 = vld [vmem:[#allocation1] sm:$0x1]  }
   0xa   :  { %11 = vrot.lane.b32.xlu0 %v10_v1, %s22_s0  ;;  %8 = vst.msk [vmem:[#allocation0] sm:$0x1] %vm7_vm0, %v6_v2  }
  0x7c   :  { %v12_v3 = vpop.permute.xlu0 %11  }
  0x7d   :  { %14 = vst.msk [vmem:[#allocation0] sm:$0x1] %vm13_vm1, %v12_v3  }
  0x84   :  { %v18_v4 = vld [vmem:[#allocation0] sm:$0x1] }
  0x85   :  { %20 = vst [vmem:[%s40_s1] sm:$0x1] %v18_v4 }

// kernel: conv_block.3
= control target key start
LH: loop header
LB: loop body
LE: loop exit
PB: predicated region body
PF: predicated region fallthrough
CT: control target
= control target key end

     0   :  { %vm604_vm0 = vcmask 60416   ;;  %s1472_s0 = inlined_call_operand.vmem [shape: bf16[512,8], index: 0, kind: input, shape index: {}, may-alias: {0,3}]   ;;  %s1473_s1 = inlined_call_operand.vmem [shape: f32[1,8], index: 1, kind: input, shape index: {}]   ;;  %s1474_s2 = inlined_call_operand.vmem [shape: f32[1,8], index: 2, kind: input, shape index: {}]   ;;  %s1475_s3 = inlined_call_operand.vmem [shape: bf16[512,8], index: 3, kind: output, shape index: {}, may-alias: {0,3}]  }
   0x1   :  { %v804_v0 = vld [vmem:[%s1472_s0] sm:$0xff]   ;;  %v931_v4 = vld [vmem:[%s1472_s0 + $0x8] sm:$0xff]   ;;  %v932_v5 = vld [vmem:[%s1472_s0 + $0x10] sm:$0xff]  }
   0x2   :  { %v988_v1 = vld [vmem:[%s1473_s1] ss:$0 sm:$0xff]  ;;  %v805_v2 = vunpack.c.l.bf16 %v804_v0  ;;  %v806_v3 = vunpack.c.h.bf16 %v804_v0  ;;  %v933_v6 = vld [vmem:[%s1472_s0 + $0x18] sm:$0xff]   ;;  %v809_v8 = vunpack.c.l.bf16 %v931_v4  ;;  %v810_v9 = vunpack.c.h.bf16 %v931_v4  ;;  %v935_v41 = vld [vmem:[%s1472_s0 + $0x28] sm:$0xff]  }
   0x3   :  { %v1002_v7 = vld [vmem:[%s1474_s2] ss:$0 sm:$0xff]  ;;  %v813_v10 = vunpack.c.l.bf16 %v932_v5  ;;  %v814_v11 = vunpack.c.h.bf16 %v932_v5  ;;  %v817_v14 = vunpack.c.l.bf16 %v933_v6  ;;  %v818_v15 = vunpack.c.h.bf16 %v933_v6  ;;  %v936_v42 = vld [vmem:[%s1472_s0 + $0x30] sm:$0xff]   ;;  %v937_v47 = vld [vmem:[%s1472_s0 + $0x38] sm:$0xff]  }
   0x4   :  { %v149_v12 = vmul.f32 %v805_v2, %v988_v1  ;;  %v150_v13 = vmul.f32 %v806_v3, %v988_v1  ;;  %v151_v16 = vmul.f32 %v809_v8, %v988_v1  ;;  %v152_v17 = vmul.f32 %v810_v9, %v988_v1  ;;  %v934_v36 = vld [vmem:[%s1472_s0 + $0x20] sm:$0xff]  }
   0x5   :  { %v153_v18 = vmul.f32 %v813_v10, %v988_v1  ;;  %v154_v19 = vmul.f32 %v814_v11, %v988_v1  ;;  %v155_v22 = vmul.f32 %v817_v14, %v988_v1  ;;  %v156_v23 = vmul.f32 %v818_v15, %v988_v1 }
   0x6   :  { %v220_v20 = vadd.f32 %v1002_v7, %v149_v12  ;;  %v221_v21 = vadd.f32 %v1002_v7, %v150_v13  ;;  %v222_v24 = vadd.f32 %v1002_v7, %v151_v16  ;;  %v223_v25 = vadd.f32 %v1002_v7, %v152_v17 }
   0x7   :  { %v224_v26 = vadd.f32 %v1002_v7, %v153_v18  ;;  %v225_v27 = vadd.f32 %v1002_v7, %v154_v19  ;;  %v226_v30 = vadd.f32 %v1002_v7, %v155_v22  ;;  %v227_v31 = vadd.f32 %v1002_v7, %v156_v23 }
   0x8   :  { %v284_v28 = vmax.f32 %v220_v20, 0.0  ;;  %v285_v29 = vmax.f32 %v221_v21, 0.0  ;;  %v286_v32 = vmax.f32 %v222_v24, 0.0  ;;  %v287_v33 = vmax.f32 %v223_v25, 0.0 }
   0x9   :  { %v288_v34 = vmax.f32 %v224_v26, 0.0  ;;  %v289_v35 = vmax.f32 %v225_v27, 0.0  ;;  %v290_v39 = vmax.f32 %v226_v30, 0.0  ;;  %v291_v40 = vmax.f32 %v227_v31, 0.0 }
   0xa   :  { %v739_v37 = vpack.c.bf16 %v284_v28, %v284_v28  ;;  %v740_v38 = vpack.c.bf16 %v285_v29, %v285_v29  ;;  %v741_v43 = vpack.c.bf16 %v286_v32, %v286_v32  ;;  %v742_v44 = vpack.c.bf16 %v287_v33, %v287_v33 }
   0xb   :  { %v743_v45 = vpack.c.bf16 %v288_v34, %v288_v34  ;;  %v744_v46 = vpack.c.bf16 %v289_v35, %v289_v35  ;;  %v745_v48 = vpack.c.bf16 %v290_v39, %v290_v39  ;;  %v746_v49 = vpack.c.bf16 %v291_v40, %v291_v40 }
   0xc   :  { %605 = vst.msk [vmem:[%s1475_s3] sm:$0xf] %vm604_vm0, %v739_v37  ;;  %606 = vst.msk [vmem:[%s1475_s3 + $0x4] sm:$0xf] %vm604_vm0, %v740_v38  ;;  %v821_v50 = vunpack.c.l.bf16 %v934_v36  ;;  %v822_v51 = vunpack.c.h.bf16 %v934_v36  ;;  %v825_v52 = vunpack.c.l.bf16 %v935_v41  ;;  %v826_v53 = vunpack.c.h.bf16 %v935_v41 }
   0xd   :  { %607 = vst.msk [vmem:[%s1475_s3 + $0x8] sm:$0xf] %vm604_vm0, %v741_v43  ;;  %608 = vst.msk [vmem:[%s1475_s3 + $0xc] sm:$0xf] %vm604_vm0, %v742_v44  ;;  %v829_v54 = vunpack.c.l.bf16 %v936_v42  ;;  %v830_v55 = vunpack.c.h.bf16 %v936_v42  ;;  %v833_v58 = vunpack.c.l.bf16 %v937_v47  ;;  %v834_v59 = vunpack.c.h.bf16 %v937_v47 }
   0xe   :  { %609 = vst.msk [vmem:[%s1475_s3 + $0x10] sm:$0xf] %vm604_vm0, %v743_v45  ;;  %610 = vst.msk [vmem:[%s1475_s3 + $0x14] sm:$0xf] %vm604_vm0, %v744_v46  ;;  %v157_v56 = vmul.f32 %v821_v50, %v988_v1  ;;  %v158_v57 = vmul.f32 %v822_v51, %v988_v1  ;;  %v159_v60 = vmul.f32 %v825_v52, %v988_v1 }
   0xf   :  { %611 = vst.msk [vmem:[%s1475_s3 + $0x18] sm:$0xf] %vm604_vm0, %v745_v48  ;;  %612 = vst.msk [vmem:[%s1475_s3 + $0x1c] sm:$0xf] %vm604_vm0, %v746_v49  ;;  %v160_v61 = vmul.f32 %v826_v53, %v988_v1  ;;  %v161_v62 = vmul.f32 %v829_v54, %v988_v1  ;;  %v162_v63 = vmul.f32 %v830_v55, %v988_v1 }
  0x10   :  { %v228_v0 = vadd.f32 %v1002_v7, %v157_v56  ;;  %v229_v2 = vadd.f32 %v1002_v7, %v158_v57  ;;  %v163_v3 = vmul.f32 %v833_v58, %v988_v1  ;;  %v164_v4 = vmul.f32 %v834_v59, %v988_v1 }
  0x11   :  { %v230_v5 = vadd.f32 %v1002_v7, %v159_v60  ;;  %v231_v6 = vadd.f32 %v1002_v7, %v160_v61  ;;  %v232_v8 = vadd.f32 %v1002_v7, %v161_v62  ;;  %v233_v9 = vadd.f32 %v1002_v7, %v162_v63 }
  0x12   :  { %v292_v10 = vmax.f32 %v228_v0, 0.0  ;;  %v293_v11 = vmax.f32 %v229_v2, 0.0  ;;  %v234_v12 = vadd.f32 %v1002_v7, %v163_v3  ;;  %v235_v13 = vadd.f32 %v1002_v7, %v164_v4 }
  0x13   :  { %v294_v14 = vmax.f32 %v230_v5, 0.0  ;;  %v295_v15 = vmax.f32 %v231_v6, 0.0  ;;  %v296_v16 = vmax.f32 %v232_v8, 0.0  ;;  %v297_v17 = vmax.f32 %v233_v9, 0.0 }
  0x14   :  { %v747_v19 = vpack.c.bf16 %v292_v10, %v292_v10  ;;  %v748_v20 = vpack.c.bf16 %v293_v11, %v293_v11  ;;  %v298_v21 = vmax.f32 %v234_v12, 0.0  ;;  %v299_v22 = vmax.f32 %v235_v13, 0.0 }
  0x15   :  { %v749_v25 = vpack.c.bf16 %v294_v14, %v294_v14  ;;  %v750_v26 = vpack.c.bf16 %v295_v15, %v295_v15  ;;  %v751_v27 = vpack.c.bf16 %v296_v16, %v296_v16  ;;  %v752_v28 = vpack.c.bf16 %v297_v17, %v297_v17 }
  0x16   :  { %v938_v18 = vld [vmem:[%s1472_s0 + $0x40] sm:$0xff]   ;;  %v939_v23 = vld [vmem:[%s1472_s0 + $0x48] sm:$0xff]   ;;  %v940_v24 = vld [vmem:[%s1472_s0 + $0x50] sm:$0xff]   ;;  %v753_v30 = vpack.c.bf16 %v298_v21, %v298_v21  ;;  %v754_v31 = vpack.c.bf16 %v299_v22, %v299_v22 }
  0x17   :  { %v941_v29 = vld [vmem:[%s1472_s0 + $0x58] sm:$0xff]   ;;  %v837_v32 = vunpack.c.l.bf16 %v938_v18  ;;  %v838_v33 = vunpack.c.h.bf16 %v938_v18  ;;  %v841_v34 = vunpack.c.l.bf16 %v939_v23  ;;  %v842_v35 = vunpack.c.h.bf16 %v939_v23 }
  0x18   :  { %613 = vst.msk [vmem:[%s1475_s3 + $0x20] sm:$0xf] %vm604_vm0, %v747_v19  ;;  %614 = vst.msk [vmem:[%s1475_s3 + $0x24] sm:$0xf] %vm604_vm0, %v748_v20  ;;  %v845_v36 = vunpack.c.l.bf16 %v940_v24  ;;  %v846_v37 = vunpack.c.h.bf16 %v940_v24  ;;  %v849_v40 = vunpack.c.l.bf16 %v941_v29  ;;  %v850_v41 = vunpack.c.h.bf16 %v941_v29 }
  0x19   :  { %615 = vst.msk [vmem:[%s1475_s3 + $0x28] sm:$0xf] %vm604_vm0, %v749_v25  ;;  %616 = vst.msk [vmem:[%s1475_s3 + $0x2c] sm:$0xf] %vm604_vm0, %v750_v26  ;;  %v165_v38 = vmul.f32 %v837_v32, %v988_v1  ;;  %v166_v39 = vmul.f32 %v838_v33, %v988_v1  ;;  %v167_v42 = vmul.f32 %v841_v34, %v988_v1 }
  0x1a   :  { %617 = vst.msk [vmem:[%s1475_s3 + $0x30] sm:$0xf] %vm604_vm0, %v751_v27  ;;  %618 = vst.msk [vmem:[%s1475_s3 + $0x34] sm:$0xf] %vm604_vm0, %v752_v28  ;;  %v168_v43 = vmul.f32 %v842_v35, %v988_v1  ;;  %v169_v44 = vmul.f32 %v845_v36, %v988_v1  ;;  %v170_v45 = vmul.f32 %v846_v37, %v988_v1 }
  0x1b   :  { %619 = vst.msk [vmem:[%s1475_s3 + $0x38] sm:$0xf] %vm604_vm0, %v753_v30  ;;  %620 = vst.msk [vmem:[%s1475_s3 + $0x3c] sm:$0xf] %vm604_vm0, %v754_v31  ;;  %v236_v46 = vadd.f32 %v1002_v7, %v165_v38  ;;  %v237_v47 = vadd.f32 %v1002_v7, %v166_v39  ;;  %v171_v48 = vmul.f32 %v849_v40, %v988_v1 }
  0x1c   :  { %v172_v49 = vmul.f32 %v850_v41, %v988_v1  ;;  %v238_v50 = vadd.f32 %v1002_v7, %v167_v42  ;;  %v239_v51 = vadd.f32 %v1002_v7, %v168_v43  ;;  %v240_v52 = vadd.f32 %v1002_v7, %v169_v44 }
  0x1d   :  { %v241_v53 = vadd.f32 %v1002_v7, %v170_v45  ;;  %v300_v54 = vmax.f32 %v236_v46, 0.0  ;;  %v301_v55 = vmax.f32 %v237_v47, 0.0  ;;  %v242_v56 = vadd.f32 %v1002_v7, %v171_v48 }
  0x1e   :  { %v243_v57 = vadd.f32 %v1002_v7, %v172_v49  ;;  %v302_v58 = vmax.f32 %v238_v50, 0.0  ;;  %v303_v59 = vmax.f32 %v239_v51, 0.0  ;;  %v304_v60 = vmax.f32 %v240_v52, 0.0 }
  0x1f   :  { %v305_v61 = vmax.f32 %v241_v53, 0.0  ;;  %v755_v63 = vpack.c.bf16 %v300_v54, %v300_v54  ;;  %v756_v0 = vpack.c.bf16 %v301_v55, %v301_v55  ;;  %v306_v2 = vmax.f32 %v242_v56, 0.0 }
  0x20   :  { %v307_v3 = vmax.f32 %v243_v57, 0.0  ;;  %v757_v6 = vpack.c.bf16 %v302_v58, %v302_v58  ;;  %v758_v8 = vpack.c.bf16 %v303_v59, %v303_v59  ;;  %v759_v9 = vpack.c.bf16 %v304_v60, %v304_v60 }
  0x21   :  { %v760_v10 = vpack.c.bf16 %v305_v61, %v305_v61  ;;  %v761_v12 = vpack.c.bf16 %v306_v2, %v306_v2 }
  0x22   :  { %v942_v62 = vld [vmem:[%s1472_s0 + $0x60] sm:$0xff]   ;;  %v943_v4 = vld [vmem:[%s1472_s0 + $0x68] sm:$0xff]   ;;  %v944_v5 = vld [vmem:[%s1472_s0 + $0x70] sm:$0xff]   ;;  %v762_v13 = vpack.c.bf16 %v307_v3, %v307_v3 }
  0x23   :  { %v945_v11 = vld [vmem:[%s1472_s0 + $0x78] sm:$0xff]   ;;  %v853_v14 = vunpack.c.l.bf16 %v942_v62  ;;  %v854_v15 = vunpack.c.h.bf16 %v942_v62  ;;  %v857_v16 = vunpack.c.l.bf16 %v943_v4  ;;  %v858_v17 = vunpack.c.h.bf16 %v943_v4 }
  0x24   :  { %621 = vst.msk [vmem:[%s1475_s3 + $0x40] sm:$0xf] %vm604_vm0, %v755_v63  ;;  %622 = vst.msk [vmem:[%s1475_s3 + $0x44] sm:$0xf] %vm604_vm0, %v756_v0  ;;  %v861_v18 = vunpack.c.l.bf16 %v944_v5  ;;  %v862_v19 = vunpack.c.h.bf16 %v944_v5  ;;  %v865_v22 = vunpack.c.l.bf16 %v945_v11  ;;  %v866_v23 = vunpack.c.h.bf16 %v945_v11 }
  0x25   :  { %623 = vst.msk [vmem:[%s1475_s3 + $0x48] sm:$0xf] %vm604_vm0, %v757_v6  ;;  %624 = vst.msk [vmem:[%s1475_s3 + $0x4c] sm:$0xf] %vm604_vm0, %v758_v8  ;;  %v173_v20 = vmul.f32 %v853_v14, %v988_v1  ;;  %v174_v21 = vmul.f32 %v854_v15, %v988_v1  ;;  %v175_v24 = vmul.f32 %v857_v16, %v988_v1 }
  0x26   :  { %625 = vst.msk [vmem:[%s1475_s3 + $0x50] sm:$0xf] %vm604_vm0, %v759_v9  ;;  %626 = vst.msk [vmem:[%s1475_s3 + $0x54] sm:$0xf] %vm604_vm0, %v760_v10  ;;  %v176_v25 = vmul.f32 %v858_v17, %v988_v1  ;;  %v177_v26 = vmul.f32 %v861_v18, %v988_v1  ;;  %v178_v27 = vmul.f32 %v862_v19, %v988_v1 }
  0x27   :  { %627 = vst.msk [vmem:[%s1475_s3 + $0x58] sm:$0xf] %vm604_vm0, %v761_v12  ;;  %628 = vst.msk [vmem:[%s1475_s3 + $0x5c] sm:$0xf] %vm604_vm0, %v762_v13  ;;  %v244_v28 = vadd.f32 %v1002_v7, %v173_v20  ;;  %v245_v29 = vadd.f32 %v1002_v7, %v174_v21  ;;  %v179_v30 = vmul.f32 %v865_v22, %v988_v1 }
  0x28   :  { %v180_v31 = vmul.f32 %v866_v23, %v988_v1  ;;  %v246_v32 = vadd.f32 %v1002_v7, %v175_v24  ;;  %v247_v33 = vadd.f32 %v1002_v7, %v176_v25  ;;  %v248_v34 = vadd.f32 %v1002_v7, %v177_v26 }
  0x29   :  { %v249_v35 = vadd.f32 %v1002_v7, %v178_v27  ;;  %v308_v36 = vmax.f32 %v244_v28, 0.0  ;;  %v309_v37 = vmax.f32 %v245_v29, 0.0  ;;  %v250_v38 = vadd.f32 %v1002_v7, %v179_v30 }
  0x2a   :  { %v251_v39 = vadd.f32 %v1002_v7, %v180_v31  ;;  %v310_v40 = vmax.f32 %v246_v32, 0.0  ;;  %v311_v41 = vmax.f32 %v247_v33, 0.0  ;;  %v312_v42 = vmax.f32 %v248_v34, 0.0 }
  0x2b   :  { %v313_v43 = vmax.f32 %v249_v35, 0.0  ;;  %v763_v45 = vpack.c.bf16 %v308_v36, %v308_v36  ;;  %v764_v46 = vpack.c.bf16 %v309_v37, %v309_v37  ;;  %v314_v47 = vmax.f32 %v250_v38, 0.0 }
  0x2c   :  { %v315_v48 = vmax.f32 %v251_v39, 0.0  ;;  %v765_v51 = vpack.c.bf16 %v310_v40, %v310_v40  ;;  %v766_v52 = vpack.c.bf16 %v311_v41, %v311_v41  ;;  %v767_v53 = vpack.c.bf16 %v312_v42, %v312_v42 }
  0x2d   :  { %v768_v54 = vpack.c.bf16 %v313_v43, %v313_v43  ;;  %v769_v56 = vpack.c.bf16 %v314_v47, %v314_v47 }
  0x2e   :  { %v946_v44 = vld [vmem:[%s1472_s0 + $0x80] sm:$0xff]   ;;  %v947_v49 = vld [vmem:[%s1472_s0 + $0x88] sm:$0xff]   ;;  %v948_v50 = vld [vmem:[%s1472_s0 + $0x90] sm:$0xff]   ;;  %v770_v57 = vpack.c.bf16 %v315_v48, %v315_v48 }
  0x2f   :  { %v949_v55 = vld [vmem:[%s1472_s0 + $0x98] sm:$0xff]   ;;  %v869_v58 = vunpack.c.l.bf16 %v946_v44  ;;  %v870_v59 = vunpack.c.h.bf16 %v946_v44  ;;  %v873_v60 = vunpack.c.l.bf16 %v947_v49  ;;  %v874_v61 = vunpack.c.h.bf16 %v947_v49 }
  0x30   :  { %629 = vst.msk [vmem:[%s1475_s3 + $0x60] sm:$0xf] %vm604_vm0, %v763_v45  ;;  %630 = vst.msk [vmem:[%s1475_s3 + $0x64] sm:$0xf] %vm604_vm0, %v764_v46  ;;  %v877_v62 = vunpack.c.l.bf16 %v948_v50  ;;  %v878_v63 = vunpack.c.h.bf16 %v948_v50  ;;  %v881_v3 = vunpack.c.l.bf16 %v949_v55  ;;  %v882_v4 = vunpack.c.h.bf16 %v949_v55 }
  0x31   :  { %631 = vst.msk [vmem:[%s1475_s3 + $0x68] sm:$0xf] %vm604_vm0, %v765_v51  ;;  %632 = vst.msk [vmem:[%s1475_s3 + $0x6c] sm:$0xf] %vm604_vm0, %v766_v52  ;;  %v181_v0 = vmul.f32 %v869_v58, %v988_v1  ;;  %v182_v2 = vmul.f32 %v870_v59, %v988_v1  ;;  %v183_v5 = vmul.f32 %v873_v60, %v988_v1 }
  0x32   :  { %633 = vst.msk [vmem:[%s1475_s3 + $0x70] sm:$0xf] %vm604_vm0, %v767_v53  ;;  %634 = vst.msk [vmem:[%s1475_s3 + $0x74] sm:$0xf] %vm604_vm0, %v768_v54  ;;  %v184_v6 = vmul.f32 %v874_v61, %v988_v1  ;;  %v185_v8 = vmul.f32 %v877_v62, %v988_v1  ;;  %v186_v9 = vmul.f32 %v878_v63, %v988_v1 }
  0x33   :  { %635 = vst.msk [vmem:[%s1475_s3 + $0x78] sm:$0xf] %vm604_vm0, %v769_v56  ;;  %636 = vst.msk [vmem:[%s1475_s3 + $0x7c] sm:$0xf] %vm604_vm0, %v770_v57  ;;  %v252_v10 = vadd.f32 %v1002_v7, %v181_v0  ;;  %v253_v11 = vadd.f32 %v1002_v7, %v182_v2  ;;  %v187_v12 = vmul.f32 %v881_v3, %v988_v1 }
  0x34   :  { %v188_v13 = vmul.f32 %v882_v4, %v988_v1  ;;  %v254_v14 = vadd.f32 %v1002_v7, %v183_v5  ;;  %v255_v15 = vadd.f32 %v1002_v7, %v184_v6  ;;  %v256_v16 = vadd.f32 %v1002_v7, %v185_v8 }
  0x35   :  { %v257_v17 = vadd.f32 %v1002_v7, %v186_v9  ;;  %v316_v18 = vmax.f32 %v252_v10, 0.0  ;;  %v317_v19 = vmax.f32 %v253_v11, 0.0  ;;  %v258_v20 = vadd.f32 %v1002_v7, %v187_v12 }
  0x36   :  { %v259_v21 = vadd.f32 %v1002_v7, %v188_v13  ;;  %v318_v22 = vmax.f32 %v254_v14, 0.0  ;;  %v319_v23 = vmax.f32 %v255_v15, 0.0  ;;  %v320_v24 = vmax.f32 %v256_v16, 0.0 }
  0x37   :  { %v321_v25 = vmax.f32 %v257_v17, 0.0  ;;  %v771_v27 = vpack.c.bf16 %v316_v18, %v316_v18  ;;  %v772_v28 = vpack.c.bf16 %v317_v19, %v317_v19  ;;  %v322_v29 = vmax.f32 %v258_v20, 0.0 }
  0x38   :  { %v323_v30 = vmax.f32 %v259_v21, 0.0  ;;  %v773_v33 = vpack.c.bf16 %v318_v22, %v318_v22  ;;  %v774_v34 = vpack.c.bf16 %v319_v23, %v319_v23  ;;  %v775_v35 = vpack.c.bf16 %v320_v24, %v320_v24 }
  0x39   :  { %v776_v36 = vpack.c.bf16 %v321_v25, %v321_v25  ;;  %v777_v38 = vpack.c.bf16 %v322_v29, %v322_v29 }
  0x3a   :  { %v950_v26 = vld [vmem:[%s1472_s0 + $0xa0] sm:$0xff]   ;;  %v951_v31 = vld [vmem:[%s1472_s0 + $0xa8] sm:$0xff]   ;;  %v952_v32 = vld [vmem:[%s1472_s0 + $0xb0] sm:$0xff]   ;;  %v778_v39 = vpack.c.bf16 %v323_v30, %v323_v30 }
  0x3b   :  { %v953_v37 = vld [vmem:[%s1472_s0 + $0xb8] sm:$0xff]   ;;  %v885_v40 = vunpack.c.l.bf16 %v950_v26  ;;  %v886_v41 = vunpack.c.h.bf16 %v950_v26  ;;  %v889_v42 = vunpack.c.l.bf16 %v951_v31  ;;  %v890_v43 = vunpack.c.h.bf16 %v951_v31 }
  0x3c   :  { %637 = vst.msk [vmem:[%s1475_s3 + $0x80] sm:$0xf] %vm604_vm0, %v771_v27  ;;  %638 = vst.msk [vmem:[%s1475_s3 + $0x84] sm:$0xf] %vm604_vm0, %v772_v28  ;;  %v893_v44 = vunpack.c.l.bf16 %v952_v32  ;;  %v894_v45 = vunpack.c.h.bf16 %v952_v32  ;;  %v897_v48 = vunpack.c.l.bf16 %v953_v37  ;;  %v898_v49 = vunpack.c.h.bf16 %v953_v37 }
  0x3d   :  { %639 = vst.msk [vmem:[%s1475_s3 + $0x88] sm:$0xf] %vm604_vm0, %v773_v33  ;;  %640 = vst.msk [vmem:[%s1475_s3 + $0x8c] sm:$0xf] %vm604_vm0, %v774_v34  ;;  %v189_v46 = vmul.f32 %v885_v40, %v988_v1  ;;  %v190_v47 = vmul.f32 %v886_v41, %v988_v1  ;;  %v191_v50 = vmul.f32 %v889_v42, %v988_v1 }
  0x3e   :  { %641 = vst.msk [vmem:[%s1475_s3 + $0x90] sm:$0xf] %vm604_vm0, %v775_v35  ;;  %642 = vst.msk [vmem:[%s1475_s3 + $0x94] sm:$0xf] %vm604_vm0, %v776_v36  ;;  %v192_v51 = vmul.f32 %v890_v43, %v988_v1  ;;  %v193_v52 = vmul.f32 %v893_v44, %v988_v1  ;;  %v194_v53 = vmul.f32 %v894_v45, %v988_v1 }
  0x3f   :  { %643 = vst.msk [vmem:[%s1475_s3 + $0x98] sm:$0xf] %vm604_vm0, %v777_v38  ;;  %644 = vst.msk [vmem:[%s1475_s3 + $0x9c] sm:$0xf] %vm604_vm0, %v778_v39  ;;  %v260_v54 = vadd.f32 %v1002_v7, %v189_v46  ;;  %v261_v55 = vadd.f32 %v1002_v7, %v190_v47  ;;  %v195_v56 = vmul.f32 %v897_v48, %v988_v1 }
  0x40   :  { %v196_v57 = vmul.f32 %v898_v49, %v988_v1  ;;  %v262_v58 = vadd.f32 %v1002_v7, %v191_v50  ;;  %v263_v59 = vadd.f32 %v1002_v7, %v192_v51  ;;  %v264_v60 = vadd.f32 %v1002_v7, %v193_v52 }
  0x41   :  { %v265_v61 = vadd.f32 %v1002_v7, %v194_v53  ;;  %v324_v62 = vmax.f32 %v260_v54, 0.0  ;;  %v325_v63 = vmax.f32 %v261_v55, 0.0  ;;  %v266_v0 = vadd.f32 %v1002_v7, %v195_v56 }
  0x42   :  { %v267_v2 = vadd.f32 %v1002_v7, %v196_v57  ;;  %v326_v3 = vmax.f32 %v262_v58, 0.0  ;;  %v327_v4 = vmax.f32 %v263_v59, 0.0  ;;  %v328_v5 = vmax.f32 %v264_v60, 0.0 }
  0x43   :  { %v329_v6 = vmax.f32 %v265_v61, 0.0  ;;  %v779_v9 = vpack.c.bf16 %v324_v62, %v324_v62  ;;  %v780_v10 = vpack.c.bf16 %v325_v63, %v325_v63  ;;  %v330_v11 = vmax.f32 %v266_v0, 0.0 }
  0x44   :  { %v331_v12 = vmax.f32 %v267_v2, 0.0  ;;  %v781_v15 = vpack.c.bf16 %v326_v3, %v326_v3  ;;  %v782_v16 = vpack.c.bf16 %v327_v4, %v327_v4  ;;  %v783_v17 = vpack.c.bf16 %v328_v5, %v328_v5 }
  0x45   :  { %v784_v18 = vpack.c.bf16 %v329_v6, %v329_v6  ;;  %v785_v20 = vpack.c.bf16 %v330_v11, %v330_v11 }
  0x46   :  { %v954_v8 = vld [vmem:[%s1472_s0 + $0xc0] sm:$0xff]   ;;  %v955_v13 = vld [vmem:[%s1472_s0 + $0xc8] sm:$0xff]   ;;  %v956_v14 = vld [vmem:[%s1472_s0 + $0xd0] sm:$0xff]   ;;  %v786_v21 = vpack.c.bf16 %v331_v12, %v331_v12 }
  0x47   :  { %v957_v19 = vld [vmem:[%s1472_s0 + $0xd8] sm:$0xff]   ;;  %v901_v22 = vunpack.c.l.bf16 %v954_v8  ;;  %v902_v23 = vunpack.c.h.bf16 %v954_v8  ;;  %v905_v24 = vunpack.c.l.bf16 %v955_v13  ;;  %v906_v25 = vunpack.c.h.bf16 %v955_v13 }
  0x48   :  { %645 = vst.msk [vmem:[%s1475_s3 + $0xa0] sm:$0xf] %vm604_vm0, %v779_v9  ;;  %646 = vst.msk [vmem:[%s1475_s3 + $0xa4] sm:$0xf] %vm604_vm0, %v780_v10  ;;  %v909_v26 = vunpack.c.l.bf16 %v956_v14  ;;  %v910_v27 = vunpack.c.h.bf16 %v956_v14  ;;  %v913_v30 = vunpack.c.l.bf16 %v957_v19  ;;  %v914_v31 = vunpack.c.h.bf16 %v957_v19 }
  0x49   :  { %647 = vst.msk [vmem:[%s1475_s3 + $0xa8] sm:$0xf] %vm604_vm0, %v781_v15  ;;  %648 = vst.msk [vmem:[%s1475_s3 + $0xac] sm:$0xf] %vm604_vm0, %v782_v16  ;;  %v197_v28 = vmul.f32 %v901_v22, %v988_v1  ;;  %v198_v29 = vmul.f32 %v902_v23, %v988_v1  ;;  %v199_v32 = vmul.f32 %v905_v24, %v988_v1 }
  0x4a   :  { %649 = vst.msk [vmem:[%s1475_s3 + $0xb0] sm:$0xf] %vm604_vm0, %v783_v17  ;;  %650 = vst.msk [vmem:[%s1475_s3 + $0xb4] sm:$0xf] %vm604_vm0, %v784_v18  ;;  %v200_v33 = vmul.f32 %v906_v25, %v988_v1  ;;  %v201_v34 = vmul.f32 %v909_v26, %v988_v1  ;;  %v202_v35 = vmul.f32 %v910_v27, %v988_v1 }
  0x4b   :  { %651 = vst.msk [vmem:[%s1475_s3 + $0xb8] sm:$0xf] %vm604_vm0, %v785_v20  ;;  %652 = vst.msk [vmem:[%s1475_s3 + $0xbc] sm:$0xf] %vm604_vm0, %v786_v21  ;;  %v268_v36 = vadd.f32 %v1002_v7, %v197_v28  ;;  %v269_v37 = vadd.f32 %v1002_v7, %v198_v29  ;;  %v203_v38 = vmul.f32 %v913_v30, %v988_v1 }
  0x4c   :  { %v204_v39 = vmul.f32 %v914_v31, %v988_v1  ;;  %v270_v40 = vadd.f32 %v1002_v7, %v199_v32  ;;  %v271_v41 = vadd.f32 %v1002_v7, %v200_v33  ;;  %v272_v42 = vadd.f32 %v1002_v7, %v201_v34 }
  0x4d   :  { %v273_v43 = vadd.f32 %v1002_v7, %v202_v35  ;;  %v332_v44 = vmax.f32 %v268_v36, 0.0  ;;  %v333_v45 = vmax.f32 %v269_v37, 0.0  ;;  %v274_v46 = vadd.f32 %v1002_v7, %v203_v38 }
  0x4e   :  { %v275_v47 = vadd.f32 %v1002_v7, %v204_v39  ;;  %v334_v48 = vmax.f32 %v270_v40, 0.0  ;;  %v335_v49 = vmax.f32 %v271_v41, 0.0  ;;  %v336_v50 = vmax.f32 %v272_v42, 0.0 }
  0x4f   :  { %v337_v51 = vmax.f32 %v273_v43, 0.0  ;;  %v787_v53 = vpack.c.bf16 %v332_v44, %v332_v44  ;;  %v788_v54 = vpack.c.bf16 %v333_v45, %v333_v45  ;;  %v338_v55 = vmax.f32 %v274_v46, 0.0 }
  0x50   :  { %v339_v56 = vmax.f32 %v275_v47, 0.0  ;;  %v789_v59 = vpack.c.bf16 %v334_v48, %v334_v48  ;;  %v790_v60 = vpack.c.bf16 %v335_v49, %v335_v49  ;;  %v791_v61 = vpack.c.bf16 %v336_v50, %v336_v50 }
  0x51   :  { %v792_v62 = vpack.c.bf16 %v337_v51, %v337_v51  ;;  %v793_v0 = vpack.c.bf16 %v338_v55, %v338_v55 }
  0x52   :  { %v958_v52 = vld [vmem:[%s1472_s0 + $0xe0] sm:$0xff]   ;;  %v959_v57 = vld [vmem:[%s1472_s0 + $0xe8] sm:$0xff]   ;;  %v960_v58 = vld [vmem:[%s1472_s0 + $0xf0] sm:$0xff]   ;;  %v794_v2 = vpack.c.bf16 %v339_v56, %v339_v56 }
  0x53   :  { %v961_v63 = vld [vmem:[%s1472_s0 + $0xf8] sm:$0xff]   ;;  %v917_v3 = vunpack.c.l.bf16 %v958_v52  ;;  %v918_v4 = vunpack.c.h.bf16 %v958_v52  ;;  %v921_v5 = vunpack.c.l.bf16 %v959_v57  ;;  %v922_v6 = vunpack.c.h.bf16 %v959_v57 }
  0x54   :  { %653 = vst.msk [vmem:[%s1475_s3 + $0xc0] sm:$0xf] %vm604_vm0, %v787_v53  ;;  %654 = vst.msk [vmem:[%s1475_s3 + $0xc4] sm:$0xf] %vm604_vm0, %v788_v54  ;;  %v925_v8 = vunpack.c.l.bf16 %v960_v58  ;;  %v926_v9 = vunpack.c.h.bf16 %v960_v58  ;;  %v929_v12 = vunpack.c.l.bf16 %v961_v63  ;;  %v930_v13 = vunpack.c.h.bf16 %v961_v63 }
  0x55   :  { %655 = vst.msk [vmem:[%s1475_s3 + $0xc8] sm:$0xf] %vm604_vm0, %v789_v59  ;;  %656 = vst.msk [vmem:[%s1475_s3 + $0xcc] sm:$0xf] %vm604_vm0, %v790_v60  ;;  %v205_v10 = vmul.f32 %v917_v3, %v988_v1  ;;  %v206_v11 = vmul.f32 %v918_v4, %v988_v1  ;;  %v207_v14 = vmul.f32 %v921_v5, %v988_v1 }
  0x56   :  { %657 = vst.msk [vmem:[%s1475_s3 + $0xd0] sm:$0xf] %vm604_vm0, %v791_v61  ;;  %658 = vst.msk [vmem:[%s1475_s3 + $0xd4] sm:$0xf] %vm604_vm0, %v792_v62  ;;  %v208_v15 = vmul.f32 %v922_v6, %v988_v1  ;;  %v209_v16 = vmul.f32 %v925_v8, %v988_v1  ;;  %v210_v17 = vmul.f32 %v926_v9, %v988_v1 }
  0x57   :  { %659 = vst.msk [vmem:[%s1475_s3 + $0xd8] sm:$0xf] %vm604_vm0, %v793_v0  ;;  %660 = vst.msk [vmem:[%s1475_s3 + $0xdc] sm:$0xf] %vm604_vm0, %v794_v2  ;;  %v276_v18 = vadd.f32 %v1002_v7, %v205_v10  ;;  %v277_v19 = vadd.f32 %v1002_v7, %v206_v11  ;;  %v211_v20 = vmul.f32 %v929_v12, %v988_v1 }
  0x58   :  { %v212_v21 = vmul.f32 %v930_v13, %v988_v1  ;;  %v278_v22 = vadd.f32 %v1002_v7, %v207_v14  ;;  %v279_v23 = vadd.f32 %v1002_v7, %v208_v15  ;;  %v280_v24 = vadd.f32 %v1002_v7, %v209_v16 }
  0x59   :  { %v281_v25 = vadd.f32 %v1002_v7, %v210_v17  ;;  %v340_v26 = vmax.f32 %v276_v18, 0.0  ;;  %v341_v27 = vmax.f32 %v277_v19, 0.0  ;;  %v282_v28 = vadd.f32 %v1002_v7, %v211_v20 }
  0x5a   :  { %v283_v29 = vadd.f32 %v1002_v7, %v212_v21  ;;  %v342_v30 = vmax.f32 %v278_v22, 0.0  ;;  %v343_v31 = vmax.f32 %v279_v23, 0.0  ;;  %v344_v32 = vmax.f32 %v280_v24, 0.0 }
  0x5b   :  { %v345_v33 = vmax.f32 %v281_v25, 0.0  ;;  %v795_v34 = vpack.c.bf16 %v340_v26, %v340_v26  ;;  %v796_v1 = vpack.c.bf16 %v341_v27, %v341_v27  ;;  %v346_v35 = vmax.f32 %v282_v28, 0.0 }
  0x5c   :  { %v347_v36 = vmax.f32 %v283_v29, 0.0  ;;  %v797_v37 = vpack.c.bf16 %v342_v30, %v342_v30  ;;  %v798_v38 = vpack.c.bf16 %v343_v31, %v343_v31  ;;  %v799_v39 = vpack.c.bf16 %v344_v32, %v344_v32 }
  0x5d   :  { %v800_v40 = vpack.c.bf16 %v345_v33, %v345_v33  ;;  %661 = vst.msk [vmem:[%s1475_s3 + $0xe0] sm:$0xf] %vm604_vm0, %v795_v34  ;;  %662 = vst.msk [vmem:[%s1475_s3 + $0xe4] sm:$0xf] %vm604_vm0, %v796_v1  ;;  %v801_v7 = vpack.c.bf16 %v346_v35, %v346_v35 }
  0x5e   :  { %v802_v41 = vpack.c.bf16 %v347_v36, %v347_v36  ;;  %663 = vst.msk [vmem:[%s1475_s3 + $0xe8] sm:$0xf] %vm604_vm0, %v797_v37  ;;  %664 = vst.msk [vmem:[%s1475_s3 + $0xec] sm:$0xf] %vm604_vm0, %v798_v38 }
  0x5f   :  { %665 = vst.msk [vmem:[%s1475_s3 + $0xf0] sm:$0xf] %vm604_vm0, %v799_v39  ;;  %666 = vst.msk [vmem:[%s1475_s3 + $0xf4] sm:$0xf] %vm604_vm0, %v800_v40 }
  0x60   :  { %667 = vst.msk [vmem:[%s1475_s3 + $0xf8] sm:$0xf] %vm604_vm0, %v801_v7  ;;  %668 = vst.msk [vmem:[%s1475_s3 + $0xfc] sm:$0xf] %vm604_vm0, %v802_v41 }

// kernel: conv_block.2
= control target key start
LH: loop header
LB: loop body
LE: loop exit
PB: predicated region body
PF: predicated region fallthrough
CT: control target
= control target key end

     0   :  { %s2937_s15 = smov 0   ;;  %s2939_s16 = smov 0   ;;  %s3613_s0 = inlined_call_operand.vmem [shape: bf16[2,24,18,16], index: 0, kind: input, shape index: {}, may-alias: {0,1}]   ;;  %s3614_s1 = inlined_call_operand.vmem [shape: bf16[2,24,18,16], index: 1, kind: input, shape index: {}, may-alias: {0,1}]   ;;  %s3615_s2 = inlined_call_operand.vmem [shape: bf16[9,16,8], index: 2, kind: input, shape index: {}]   ;;  %s3616_s3 = inlined_call_operand.vmem [shape: bf16[512,8], index: 3, kind: output, shape index: {0}]   ;;  %s3617_s4 = inlined_call_operand.vmem [shape: f32[4,2,8], index: 4, kind: output, shape index: {1}]  }
   0x1   :  { %s2941_s17 = smov 0   ;;  %s2943_s18 = smov 0  }
   0x2   :  { %s2945_s19 = smov 0  }
   0x3 LB: > { %s24_s20 = sadd.s32 1, %s2902_s17  ;;  %s27_s21 = sadd.s32 1, %s2906_s18  ;;  %s2910_s19 = sphi %s2945_s19, %s15_s19   ;;  %s2906_s18 = sphi %s2943_s18, %s3626_s18   ;;  %s2902_s17 = sphi %s2941_s17, %s3625_s17   ;;  %s2898_s16 = sphi %s2939_s16, %s3624_s16   ;;  %s2894_s15 = sphi %s2937_s15, %s3623_s15  }
   0x4   : > { %p25_p0 = scmp.ge.s32.totalorder %s24_s20, 2  ;;  %p2254_p1 = scmp.ge.s32.totalorder %s2910_s19, 1 }
   0x5   : > { %p215_p2 = scmp.lt.s32.totalorder %s2910_s19, 5 }
   0x6   : > { %s3628_s20 = smov (%p25_p0, %s24_s20), 0  ;;  %s3630_s21 = smov (!%p25_p0, %s27_s21), %s2906_s18 }
   0x7   : > { %p216_p3 = pnand %p2254_p1, %p215_p2  ;;  %p29_p4 = scmp.ge.s32.totalorder %s3630_s21, 2 }
   0x8   : > { %v2853_v0 = vld [vmem:[%s3615_s2 + $0x8] sm:$0xff] (!%p216_p3)   ;;  %s2975_s24 = sshll.u32 (!%p216_p3), %s2894_s15, 3  ;;  %v2980_v1 = vld [vmem:[%s3615_s2 + $0x20] sm:$0xff] (!%p216_p3)   ;;  %p266_p5 = scmp.lt.s32.totalorder (!%p216_p3), %s2898_s16, 1  ;;  %vm340_vm0 = vsmask.f32 (!%p216_p3), 3328 }
   0x9   : > { %s3632_s21 = smov (%p29_p4, %s3630_s21), 0  ;;  %219 = sbr.rel (%p216_p3) target bundleno = 424 (0x1a8), region = 32 }
   0xa   : > { %2518 = vmatprep.subr.bf16.mxu1 (!%p216_p3), %v2853_v0  ;;  %p268_p6 = scmp.lt.s32.totalorder (!%p216_p3), %s2975_s24, 23  ;;  %2590 = vmatprep.subr.bf16.mxu0 (!%p216_p3), %v2980_v1  ;;  %v2993_v2 = vld [vmem:[%s3615_s2] sm:$0xff] (!%p216_p3)   ;;  %v2999_v3 = vld [vmem:[%s3615_s2 + $0x28] sm:$0xff] (!%p216_p3)   ;;  %vm341_vm1 = vsmask.f32 (!%p216_p3), 7440  ;;  %vm568_vm3 = vcmask (!%p216_p3), 130048  }
   0xb   : > { %2519 = vmatpush3.bf16.msra.mxu1 (!%p216_p3), %v2853_v0  ;;  %2591 = vmatpush3.bf16.msra.mxu0 (!%p216_p3), %v2980_v1  ;;  %vm3043_vm2 = vmor (!%p216_p3), %vm340_vm0, %vm341_vm1  ;;  %vm865_vm4 = vcmask (!%p216_p3), 1042432   ;;  %vm866_vm5 = vcmask (!%p216_p3), 1046532   ;;  %s2420_s26 = sadd.s32 (!%p216_p3), 8, %s2975_s24  ;;  %vm1994_vm7 = vcmask (!%p216_p3), 60416   ;;  %vm2011_vm8 = vcmask (!%p216_p3), 64512  }
   0xc   : > { %2536 = vmatprep.subr.bf16.mxu1 (!%p216_p3), %v2993_v2  ;;  %2608 = vmatprep.subr.bf16.mxu0 (!%p216_p3), %v2999_v3  ;;  %vm3126_vm6 = vmor (!%p216_p3), %vm865_vm4, %vm866_vm5  ;;  %p3155_p7 = scmp.lt.s32.totalorder (!%p216_p3), %s2420_s26, 23  ;;  %vm2049_vm9 = vcmask (!%p216_p3), 57344  }
  0x10   : > { %s2986_s27 = scalar_select %p266_p5, %s2898_s16, 1 }
  0x11   : > { %s269_s28 = scalar_select %p268_p6, %s2975_s24, 23 }
  0x12   : > { %s2811_s5 = smul.u32 72, %s2986_s27  ;;  %s3634_s26 = smov (!%p3155_p7, %s2420_s26), 23 }
  0x13   : > { %s2810_s8 = smul.u32 3, %s269_s28 }
  0x14   : > { %s2812_s24 = smul.u32 3, %s3634_s26 }
  0x15   : > { %s272_s9 = sadd.s32 %s2811_s5, %s2810_s8 }
  0x16   : > { %s2256_s10 = sshll.u32 %s272_s9, 2  ;;  %s3242_s29 = sadd.s32 %s2812_s24, %s2811_s5 }
  0x17   : > { %s3008_s13 = scalar_lea.vmem %s3613_s0, %s2256_s10  ;;  %s2258_s27 = sshll.u32 %s3242_s29, 2 }
  0x18   : > { %v3011_v4 = vld [vmem:[%s3008_s13] sm:$0xf]  ;;  %v3014_v5 = vld [vmem:[%s3008_s13 + $0x4] sm:$0xf]  ;;  %v3017_v6 = vld [vmem:[%s3008_s13 + $0x8] sm:$0x1]  ;;  %s3286_s8 = scalar_lea.vmem %s3614_s1, %s2258_s27 }
  0x19   : > { %v344_v7 = vshrl.u32 %v3011_v4, 16  ;;  %v347_v8 = vshll.u32 %v3011_v4, 16  ;;  %v353_v9 = vshll.u32 %v3014_v5, 16  ;;  %v357_v10 = vshrl.u32 %v3014_v5, 16  ;;  %v3024_v11 = vld [vmem:[%s3008_s13 + $0xc] sm:$0xf] }
  0x1a   : > { %v363_v12 = vshll.u32 %v3017_v6, 16  ;;  %v3028_v13 = vld [vmem:[%s3008_s13 + $0x10] sm:$0xf]  ;;  %v3031_v14 = vld [vmem:[%s3008_s13 + $0x14] sm:$0x1]  ;;  %v368_v20 = vshrl.u32 %v3024_v11, 16 }
  0x1b   : > { %v346_v15 = vrot.slane %v344_v7, 4  ;;  %v349_v16 = vrot.slane %v347_v8, 5  ;;  %v355_v17 = vrot.slane %v353_v9, 5  ;;  %v359_v18 = vrot.slane %v357_v10, 4  ;;  %v3039_v27 = vld [vmem:[%s3008_s13 + $0x18] sm:$0xf] }
  0x1c   : > { %v365_v19 = vrot.slane %v363_v12, 5  ;;  %v371_v21 = vshll.u32 %v3024_v11, 16  ;;  %v377_v22 = vshll.u32 %v3028_v13, 16  ;;  %v381_v25 = vshrl.u32 %v3028_v13, 16  ;;  %v3048_v32 = vld [vmem:[%s3008_s13 + $0x1c] sm:$0xf] }
  0x1d   : > { %v350_v23 = vor.u32 %v349_v16, %v346_v15  ;;  %v360_v24 = vor.u32 %v359_v18, %v355_v17  ;;  %v387_v26 = vshll.u32 %v3031_v14, 16  ;;  %v370_v29 = vrot.slane %v368_v20, 4  ;;  %v3052_v39 = vld [vmem:[%s3008_s13 + $0x20] sm:$0x1]  ;;  %v3062_v50 = vld [vmem:[%s3008_s13 + $0x24] sm:$0xf] }
  0x1e   : > { %v373_v30 = vrot.slane %v371_v21, 5  ;;  %v379_v31 = vrot.slane %v377_v22, 5  ;;  %v383_v35 = vrot.slane %v381_v25, 4  ;;  %v880_v38 = vrot.slane %v3031_v14, 5  ;;  %v3067_v55 = vld [vmem:[%s3008_s13 + $0x28] sm:$0xf] }
  0x1f   : > { %v351_v33 = vrot.slane %v350_v23, 4  ;;  %v361_v34 = vrot.slane %v360_v24, 4  ;;  %v389_v36 = vrot.slane %v387_v26, 5  ;;  %v392_v40 = vshrl.u32 %v3039_v27, 16  ;;  %v3075_v60 = vld [vmem:[%s3008_s13 + $0x2c] sm:$0x1] }
  0x20   : > { %v374_v37 = vor.u32 %v373_v30, %v370_v29  ;;  %v395_v41 = vshll.u32 %v3039_v27, 16  ;;  %v384_v44 = vor.u32 %v383_v35, %v379_v31  ;;  %v401_v45 = vshll.u32 %v3048_v32, 16  ;;  %v3081_v7 = vld [vmem:[%s3008_s13 + $0x30] sm:$0xf]  ;;  %v3093_v20 = vld [vmem:[%s3008_s13 + $0x34] sm:$0xf] }
  0x21   : > { %v356_v42 = vsel %vm3043_vm2, %v351_v33, %v355_v17  ;;  %v366_v43 = vsel %vm3043_vm2, %v361_v34, %v365_v19  ;;  %v394_v48 = vrot.slane %v392_v40, 4  ;;  %v405_v53 = vshrl.u32 %v3048_v32, 16  ;;  %v3088_v15 = vld [vmem:[%s3615_s2 + $0x10] sm:$0xff]   ;;  %v3100_v24 = vld [vmem:[%s3008_s13 + $0x38] sm:$0x1] }
  0x22   : > { %v2266_v46 = vcombine.low %v356_v42, %v366_v43  ;;  %v375_v47 = vrot.slane %v374_v37, 4  ;;  %v397_v49 = vrot.slane %v395_v41, 5  ;;  %v385_v51 = vrot.slane %v384_v44, 4  ;;  %v3112_v42 = vld [vmem:[%s3008_s13 + $0x3c] sm:$0xf] }
  0x23   : > { %v403_v52 = vrot.slane %v401_v45, 5  ;;  %v411_v54 = vshll.u32 %v3052_v39, 16  ;;  %v884_v58 = vrot.slane %v3048_v32, 5  ;;  %v887_v59 = vrot.slane %v3052_v39, 5 }
  0x24   : > { %2520 = vmatprep.mubr.msk.bf16.mxu1 %vm568_vm3, %v2266_v46  ;;  %v380_v56 = vsel %vm3043_vm2, %v375_v47, %v379_v31  ;;  %v398_v57 = vor.u32 %v397_v49, %v394_v48  ;;  %v390_v61 = vsel %vm3043_vm2, %v385_v51, %v389_v36  ;;  %v407_v62 = vrot.slane %v405_v53, 4  ;;  %v3119_v47 = vld [vmem:[%s3615_s2 + $0x30] sm:$0xff]   ;;  %v3122_v48 = vld [vmem:[%s3008_s13 + $0x40] sm:$0xf] }
  0x25   : > { %v413_v63 = vrot.slane %v411_v54, 5  ;;  %v416_v0 = vshrl.u32 %v3062_v50, 16  ;;  %v2267_v8 = vcombine.low %v380_v56, %v390_v61  ;;  %v419_v10 = vshll.u32 %v3062_v50, 16 }
  0x26   : > { %v399_v9 = vrot.slane %v398_v57, 4  ;;  %v425_v12 = vshll.u32 %v3067_v55, 16  ;;  %v408_v16 = vor.u32 %v407_v62, %v403_v52  ;;  %v429_v18 = vshrl.u32 %v3067_v55, 16 }
  0x27   : > { %v418_v17 = vrot.slane %v416_v0, 4  ;;  %v435_v19 = vshll.u32 %v3075_v60, 16  ;;  %2592 = vmatprep.mubr.msk.bf16.mxu0 %vm568_vm3, %v2267_v8  ;;  %2521 = vmatmul.mubr.msk.bf16.vlgmr.msra.gmra.mrb[0].mxu1 %vm568_vm3, %v2267_v8  ;;  %v421_v22 = vrot.slane %v419_v10, 5  ;;  %v440_v25 = vshrl.u32 %v3081_v7, 16  ;;  %v3144_v8 = vld [vmem:[%s3008_s13 + $0x44] sm:$0x1] }
  0x28   : > { %v404_v21 = vsel %vm3043_vm2, %v399_v9, %v403_v52  ;;  %v427_v23 = vrot.slane %v425_v12, 5  ;;  %2537 = vmatpush3.bf16.msra.mxu1 %v2993_v2  ;;  %v409_v26 = vrot.slane %v408_v16, 4  ;;  %v431_v29 = vrot.slane %v429_v18, 4 }
  0x29   : > { %v437_v30 = vrot.slane %v435_v19, 5  ;;  %v443_v31 = vshll.u32 %v3081_v7, 16  ;;  %v422_v33 = vor.u32 %v421_v22, %v418_v17  ;;  %v442_v34 = vrot.slane %v440_v25, 4  ;;  %2554 = vmatprep.subr.bf16.mxu1 %v3088_v15 }
  0x2a   : > { %v449_v35 = vshll.u32 %v3093_v20, 16  ;;  %v453_v36 = vshrl.u32 %v3093_v20, 16  ;;  %v414_v37 = vsel %vm3043_vm2, %v409_v26, %v413_v63  ;;  %v432_v40 = vor.u32 %v431_v29, %v427_v23 }
  0x2b   : > { %v445_v2 = vrot.slane %v443_v31, 5  ;;  %v459_v41 = vshll.u32 %v3100_v24, 16  ;;  %v3114_v43 = vcombine.low %v404_v21, %v414_v37  ;;  %v423_v44 = vrot.slane %v422_v33, 4  ;;  %v3177_v31 = vld [vmem:[%s3008_s13 + $0x4c] sm:$0xf] }
  0x2c   : > { %v451_v45 = vrot.slane %v449_v35, 5  ;;  %v455_v46 = vrot.slane %v453_v36, 4  ;;  %v433_v49 = vrot.slane %v432_v40, 4  ;;  %v2301_v54 = vrot.slane %v3024_v11, 9 }
  0x2d   : > { %v446_v51 = vor.u32 %v445_v2, %v442_v34  ;;  %v461_v52 = vrot.slane %v459_v41, 5  ;;  %2593 = vmatmul.mubr.msk.bf16.vlgmr.msra.gmra.mrb[0].mxu0 %vm568_vm3, %v3114_v43  ;;  %2524 = vmatprep.mubr.msk.bf16.mxu1 %vm568_vm3, %v3114_v43  ;;  %v428_v56 = vsel %vm3043_vm2, %v423_v44, %v427_v23  ;;  %v877_v61 = vrot.slane %v3028_v13, 5  ;;  %v3162_v23 = vld [vmem:[%s3008_s13 + $0x48] sm:$0xf]  ;;  %v3200_v44 = vld [vmem:[%s3008_s13 + $0x50] sm:$0x1] }
  0x2e   : > { %v456_v57 = vor.u32 %v455_v46, %v451_v45  ;;  %v464_v62 = vshrl.u32 %v3112_v42, 16  ;;  %2609 = vmatpush3.bf16.msra.mxu0 %v2999_v3  ;;  %v438_v63 = vsel %vm3043_vm2, %v433_v49, %v437_v30  ;;  %v467_v9 = vshll.u32 %v3112_v42, 16 }
  0x2f   : > { %v447_v0 = vrot.slane %v446_v51, 4  ;;  %v473_v10 = vshll.u32 %v3122_v48, 16  ;;  %v3148_v12 = vcombine.low %v428_v56, %v438_v63  ;;  %v878_v17 = vsel %vm3126_vm6, %v2301_v54, %v877_v61  ;;  %2626 = vmatprep.subr.bf16.mxu0 %v3119_v47  ;;  %v3212_v54 = vld [vmem:[%s3008_s13 + $0x54] sm:$0xf] }
  0x30   : > { %v457_v16 = vrot.slane %v456_v57, 4  ;;  %v879_v18 = vrot.slane %v877_v61, 4  ;;  %v466_v19 = vrot.slane %v464_v62, 4  ;;  %v469_v21 = vrot.slane %v467_v9, 5 }
  0x31   : > { %v452_v3 = vsel %vm3043_vm2, %v447_v0, %v451_v45  ;;  %v475_v22 = vrot.slane %v473_v10, 5  ;;  %2596 = vmatprep.mubr.msk.bf16.mxu0 %vm568_vm3, %v3148_v12  ;;  %2525 = vmatmul.mubr.msk.bf16.gmra.mrb[4].mxu1 %vm568_vm3, %v3148_v12  ;;  %v477_v29 = vshrl.u32 %v3122_v48, 16  ;;  %v483_v30 = vshll.u32 %v3144_v8, 16 }
  0x32   : > { %v462_v25 = vsel %vm3043_vm2, %v457_v16, %v461_v52  ;;  %v881_v26 = vsel %vm3126_vm6, %v879_v18, %v880_v38  ;;  %v470_v35 = vor.u32 %v469_v21, %v466_v19  ;;  %v2302_v36 = vrot.slane %v3039_v27, 9 }
  0x33   : > { %v3179_v33 = vcombine.low %v452_v3, %v462_v25  ;;  %v3181_v34 = vcombine.low %v878_v17, %v881_v26  ;;  %v479_v37 = vrot.slane %v477_v29, 4  ;;  %v485_v14 = vrot.slane %v483_v30, 5  ;;  %v3226_v17 = vld [vmem:[%s3008_s13 + $0x58] sm:$0xf] }
  0x34   : > { %v886_v38 = vrot.slane %v884_v58, 4  ;;  %v488_v40 = vshrl.u32 %v3162_v23, 16  ;;  %v471_v2 = vrot.slane %v470_v35, 4  ;;  %v885_v41 = vsel %vm3126_vm6, %v2302_v36, %v884_v58 }
  0x35   : > { %2528 = vmatprep.mubr.msk.bf16.mxu1 %vm568_vm3, %v3179_v33  ;;  %v491_v45 = vshll.u32 %v3162_v23, 16  ;;  %v497_v46 = vshll.u32 %v3177_v31, 16  ;;  %2597 = vmatmul.mubr.msk.bf16.gmra.mrb[4].mxu0 %vm568_vm3, %v3179_v33  ;;  %v480_v49 = vor.u32 %v479_v37, %v475_v22  ;;  %v501_v58 = vshrl.u32 %v3177_v31, 16 }
  0x36   : > { %v888_v51 = vsel %vm3126_vm6, %v886_v38, %v887_v59  ;;  %v490_v52 = vrot.slane %v488_v40, 4  ;;  %2610 = vmatprep.mubr.msk.bf16.mxu0 %vm568_vm3, %v3181_v34  ;;  %v476_v56 = vsel %vm3043_vm2, %v471_v2, %v475_v22  ;;  %v507_v59 = vshll.u32 %v3200_v44, 16  ;;  %v3232_v22 = vld [vmem:[%s3008_s13 + $0x5c] sm:$0x1]  ;;  %s2259_s13 = sshll.u32 %s2898_s16, 1 }
  0x37   : > { %v3218_v57 = vcombine.low %v885_v41, %v888_v51  ;;  %v493_v61 = vrot.slane %v491_v45, 5  ;;  %v499_v39 = vrot.slane %v497_v46, 5  ;;  %v481_v62 = vrot.slane %v480_v49, 4  ;;  %s3521_s14 = sadd.s32 %s2894_s15, %s2259_s13 }
  0x38   : > { %v503_v63 = vrot.slane %v501_v58, 4  ;;  %v2303_v0 = vrot.slane %v3062_v50, 9  ;;  %v891_v10 = vrot.slane %v3067_v55, 5  ;;  %v894_v16 = vrot.slane %v3075_v60, 5  ;;  %s2260_s22 = sshll.u32 %s3521_s14, 4  ;;  %p301_p9 = scmp.lt.s32.totalorder %s3521_s14, 3 }
  0x39   : > { %v494_v9 = vor.u32 %v493_v61, %v490_v52  ;;  %v512_v18 = vshrl.u32 %v3212_v54, 16  ;;  %v486_v3 = vsel %vm3043_vm2, %v481_v62, %v485_v14  ;;  %v509_v21 = vrot.slane %v507_v59, 5  ;;  %v3247_v14 = vld [vmem:[%s3615_s2 + $0x38] sm:$0xff]   ;;  %p292_p8 = scmp.lt.s32.totalorder %s2260_s22, 63 }
  0x3a   : > { %v504_v19 = vor.u32 %v503_v63, %v499_v39  ;;  %v515_v25 = vshll.u32 %v3212_v54, 16  ;;  %v3235_v26 = vcombine.low %v476_v56, %v486_v3  ;;  %v892_v60 = vsel %vm3126_vm6, %v2303_v0, %v891_v10  ;;  %s3638_s14 = smov (!%p301_p9, %s3521_s14), 3 }
  0x3b   : > { %v495_v29 = vrot.slane %v494_v9, 4  ;;  %v893_v30 = vrot.slane %v891_v10, 4  ;;  %v514_v36 = vrot.slane %v512_v18, 4  ;;  %v521_v38 = vshll.u32 %v3226_v17, 16  ;;  %s3636_s22 = smov (!%p292_p8, %s2260_s22), 63  ;;  %s2263_s26 = sshll.u32 %s3638_s14, 1 }
  0x3c   : > { %v505_v35 = vrot.slane %v504_v19, 4  ;;  %v517_v37 = vrot.slane %v515_v25, 5  ;;  %2529 = vmatmul.mubr.msk.bf16.gmra.mrb[8].mxu1 %vm568_vm3, %v3235_v26  ;;  %v525_v41 = vshrl.u32 %v3226_v17, 16  ;;  %v531_v45 = vshll.u32 %v3232_v22, 16  ;;  %s2261_s23 = sshll.u32 %s3636_s22, 2  ;;  %s304_s29 = scalar_lea.vmem %s3617_s4, %s2263_s26 }
  0x3d   : > { %v500_v40 = vsel %vm3043_vm2, %v495_v29, %v499_v39  ;;  %v895_v2 = vsel %vm3126_vm6, %v893_v30, %v894_v16  ;;  %2611 = vmatmul.mubr.msk.bf16.vlgmr.msra.gmra.mrb[0].mxu0 %vm568_vm3, %v3218_v57  ;;  %v523_v52 = vrot.slane %v521_v38, 5  ;;  %v2304_v61 = vrot.slane %v3081_v7, 9  ;;  %s3527_s15 = scalar_lea.vmem %s3616_s3, %s2261_s23 }
  0x3e   : > { %v510_v46 = vsel %vm3043_vm2, %v505_v35, %v509_v21  ;;  %v3261_v49 = vcombine.low %v892_v60, %v895_v2  ;;  %v518_v51 = vor.u32 %v517_v37, %v514_v36  ;;  %2627 = vmatpush3.bf16.msra.mxu0 %v3119_v47  ;;  %v527_v56 = vrot.slane %v525_v41, 4  ;;  %v3304_v2 = vld [vmem:[%s3286_s8 + $0x4] sm:$0xf] }
  0x3f   : > { %v3264_v58 = vcombine.low %v500_v40, %v510_v46  ;;  %v898_v62 = vrot.slane %v3093_v20, 5  ;;  %v901_v63 = vrot.slane %v3100_v24, 5  ;;  %v2305_v59 = vrot.slane %v3112_v42, 9  ;;  %2644 = vmatprep.subr.bf16.mxu0 %v3247_v14 }
  0x40   : > { %2614 = vmatprep.mubr.msk.bf16.mxu0 %vm568_vm3, %v3261_v49  ;;  %v519_v39 = vrot.slane %v518_v51, 4  ;;  %v528_v47 = vor.u32 %v527_v56, %v523_v52  ;;  %v533_v0 = vrot.slane %v531_v45, 5  ;;  %v905_v9 = vrot.slane %v3122_v48, 5  ;;  %v3315_v51 = vld [vmem:[%s3286_s8] sm:$0xf] }
  0x41   : > { %2532 = vmatprep.mubr.msk.bf16.mxu1 %vm568_vm3, %v3264_v58  ;;  %v908_v10 = vrot.slane %v3144_v8, 5  ;;  %v899_v16 = vsel %vm3126_vm6, %v2304_v61, %v898_v62  ;;  %v900_v18 = vrot.slane %v898_v62, 4  ;;  %v2283_v24 = vcombine.low %v3011_v4, %v3014_v5 }
  0x42   : > { %v912_v3 = vrot.slane %v3177_v31, 5  ;;  %v524_v19 = vsel %vm3043_vm2, %v519_v39, %v523_v52  ;;  %v529_v21 = vrot.slane %v528_v47, 4  ;;  %v906_v8 = vsel %vm3126_vm6, %v2305_v59, %v905_v9  ;;  %v3326_v39 = vld [vmem:[%s3286_s8 + $0x8] sm:$0x1] }
  0x43   : > { %v907_v25 = vrot.slane %v905_v9, 4  ;;  %v902_v29 = vsel %vm3126_vm6, %v900_v18, %v901_v63  ;;  %v2306_v60 = vrot.slane %v3162_v23, 9  ;;  %v915_v35 = vrot.slane %v3200_v44, 5 }
  0x44   : > { %v914_v30 = vrot.slane %v912_v3, 4  ;;  %v534_v36 = vsel %vm3043_vm2, %v529_v21, %v533_v0  ;;  %v3298_v37 = vcombine.low %v899_v16, %v902_v29  ;;  %v2307_v40 = vrot.slane %v3212_v54, 9 }
  0x45   : > { %v909_v38 = vsel %vm3126_vm6, %v907_v25, %v908_v10  ;;  %v3306_v41 = vcombine.low %v524_v19, %v534_v36  ;;  %v919_v46 = vrot.slane %v3226_v17, 5  ;;  %v922_v44 = vrot.slane %v3232_v22, 5  ;;  %v3351_v19 = vld [vmem:[%s3286_s8 + $0x10] sm:$0xf] }
  0x46   : > { %v3308_v45 = vcombine.low %v906_v8, %v909_v38  ;;  %2615 = vmatmul.mubr.msk.bf16.gmra.mrb[4].mxu0 %vm568_vm3, %v3298_v37  ;;  %v913_v52 = vsel %vm3126_vm6, %v2306_v60, %v912_v3  ;;  %v916_v56 = vsel %vm3126_vm6, %v914_v30, %v915_v35  ;;  %v1379_v22 = vrot.slane %v3304_v2, 5  ;;  %v337_v60 = vld [vmem:[%s3286_s8 + $0x14] sm:$0x1] }
  0x47   : > { %2533 = vmatmul.mubr.msk.bf16.gmra.mrb[12].mxu1 %vm568_vm3, %v3306_v41  ;;  %v921_v61 = vrot.slane %v919_v46, 4  ;;  %v920_v62 = vsel %vm3126_vm6, %v2307_v40, %v919_v46  ;;  %v873_v63 = vrot.slane %v3017_v6, 5  ;;  %v2351_v47 = vrot.slane %v3315_v51, 9 }
  0x48   : > { %2618 = vmatprep.mubr.msk.bf16.mxu0 %vm568_vm3, %v3308_v45  ;;  %2538 = vmatprep.mubr.msk.bf16.mxu1 %vm568_vm3, %v2283_v24  ;;  %v2300_v0 = vrot.slane %v3011_v4, 9  ;;  %v3337_v9 = vcombine.low %v913_v52, %v916_v56  ;;  %v1381_v10 = vrot.slane %v1379_v22, 4  ;;  %v1382_v16 = vrot.slane %v3326_v39, 5  ;;  %v3342_v24 = vld [vmem:[%s3286_s8 + $0xc] sm:$0xf] }
  0x49   : > { %v923_v59 = vsel %vm3126_vm6, %v921_v61, %v922_v44  ;;  %v870_v18 = vrot.slane %v3014_v5, 5  ;;  %v3346_v6 = vcombine.low %v3024_v11, %v3028_v13  ;;  %v1643_v4 = vshrl.u32 %v3342_v24, 16  ;;  %v2868_v13 = vld [vmem:[%s3615_s2 + $0x18] sm:$0xff]  }
  0x4a   : > { %v3348_v3 = vcombine.low %v920_v62, %v923_v59  ;;  %v1646_v21 = vshll.u32 %v3342_v24, 16  ;;  %v3357_v8 = vcombine.low %v3039_v27, %v3048_v32  ;;  %v1656_v29 = vshrl.u32 %v3351_v19, 16 }
  0x4b   : > { %v871_v5 = vsel %vm3126_vm6, %v2300_v0, %v870_v18  ;;  %v872_v25 = vrot.slane %v870_v18, 4  ;;  %v1380_v11 = vsel %vm3126_vm6, %v2351_v47, %v1379_v22  ;;  %v1383_v27 = vsel %vm3126_vm6, %v1381_v10, %v1382_v16 }
  0x4c   : > { %v1645_v30 = vrot.slane %v1643_v4, 4  ;;  %v1648_v35 = vrot.slane %v1646_v21, 5  ;;  %v1652_v40 = vshll.u32 %v3351_v19, 16  ;;  %v1658_v46 = vrot.slane %v1656_v29, 4 }
  0x4d   : > { %v874_v32 = vsel %vm3126_vm6, %v872_v25, %v873_v63  ;;  %v3382_v44 = vcombine.low %v1380_v11, %v1383_v27  ;;  %v1662_v52 = vshll.u32 %v337_v60, 16  ;;  %v2388_v56 = vrot.slane %v3342_v24, 9 }
  0x4e   : > { %2619 = vmatmul.mubr.msk.bf16.gmra.mrb[8].mxu0 %vm568_vm3, %v3337_v9  ;;  %v2310_v36 = vcombine.low %v871_v5, %v874_v32  ;;  %v1649_v38 = vor.u32 %v1648_v35, %v1645_v30  ;;  %v1654_v22 = vrot.slane %v1652_v40, 5  ;;  %v1797_v62 = vrot.slane %v3351_v19, 5  ;;  %v2871_v5 = vld [vmem:[%s3615_s2 + $0x40] sm:$0xff]  }
  0x4f   : > { %2539 = vmatmul.mubr.msk.bf16.vlgmr.msra.gmra.mrb[0].mxu1 %vm568_vm3, %v3346_v6  ;;  %2622 = vmatprep.mubr.msk.bf16.mxu0 %vm568_vm3, %v3348_v3  ;;  %v1800_v63 = vrot.slane %v337_v60, 5  ;;  %v3392_v59 = vcombine.low %v3081_v7, %v3093_v20  ;;  %v1664_v0 = vrot.slane %v1662_v52, 5  ;;  %v2288_v53 = vcombine.low %v3112_v42, %v3122_v48 }
  0x50   : > { %2555 = vmatpush3.bf16.msra.mxu1 %v3088_v15  ;;  %2542 = vmatprep.mubr.msk.bf16.mxu1 %vm568_vm3, %v3357_v8  ;;  %v1650_v61 = vrot.slane %v1649_v38, 4  ;;  %v3388_v15 = vcombine.low %v3062_v50, %v3067_v55  ;;  %v1659_v47 = vor.u32 %v1658_v46, %v1654_v22  ;;  %v3396_v10 = vsel %vm3126_vm6, %v2388_v56, %v1797_v62 }
  0x51   : > { %2572 = vmatprep.subr.bf16.mxu1 %v2868_v13  ;;  %v1799_v16 = vrot.slane %v1797_v62, 4  ;;  %v2289_v21 = vcombine.low %v3162_v23, %v3177_v31  ;;  %v2290_v42 = vcombine.low %v3212_v54, %v3226_v17  ;;  %v2329_v48 = vcombine.low %v3315_v51, %v3304_v2 }
  0x52   : > { %v1655_v18 = vsel %vm3043_vm2, %v1650_v61, %v1654_v22  ;;  %v1660_v4 = vrot.slane %v1659_v47, 4  ;;  %v2366_v23 = vcombine.low %v3342_v24, %v3351_v19  ;;  %v1225_v31 = vshrl.u32 %v3315_v51, 16 }
  0x53   : > { %v3404_v50 = vsel %vm3126_vm6, %v1799_v16, %v1800_v63  ;;  %v1234_v54 = vshll.u32 %v3304_v2, 16  ;;  %v1238_v17 = vshrl.u32 %v3304_v2, 16  ;;  %v1244_v2 = vshll.u32 %v3326_v39, 16 }
  0x54   : > { %v2391_v55 = vcombine.low %v3396_v10, %v3404_v50  ;;  %v1665_v7 = vsel %vm3043_vm2, %v1660_v4, %v1664_v0 }
  0x55   : > { %v2378_v20 = vcombine.low %v1655_v18, %v1665_v7  ;;  %v1236_v19 = vrot.slane %v1234_v54, 5  ;;  %v1240_v25 = vrot.slane %v1238_v17, 4 }
  0x56   : > { %2623 = vmatmul.mubr.msk.bf16.gmra.mrb[12].mxu0 %vm568_vm3, %v3382_v44 }
  0x57   : > { %2543 = vmatmul.mubr.msk.bf16.gmra.mrb[4].mxu1 %vm568_vm3, %v3388_v15  ;;  %2628 = vmatprep.mubr.msk.bf16.mxu0 %vm568_vm3, %v3357_v8 }
  0x58   : > { %2546 = vmatprep.mubr.msk.bf16.mxu1 %vm568_vm3, %v3392_v59 }
  0x5e   : > { %2629 = vmatmul.mubr.msk.bf16.vlgmr.msra.gmra.mrb[0].mxu0 %vm568_vm3, %v3388_v15 }
  0x5f   : > { %2547 = vmatmul.mubr.msk.bf16.gmra.mrb[8].mxu1 %vm568_vm3, %v2288_v53  ;;  %2645 = vmatpush3.bf16.msra.mxu0 %v3247_v14  ;;  %v1227_v14 = vrot.slane %v1225_v31, 4 }
  0x60   : > { %2550 = vmatprep.mubr.msk.bf16.mxu1 %vm568_vm3, %v2289_v21  ;;  %2632 = vmatprep.mubr.msk.bf16.mxu0 %vm568_vm3, %v3392_v59 }
  0x61   : > { %2662 = vmatprep.subr.bf16.mxu0 %v2871_v5 }
  0x66   : > { %2633 = vmatmul.mubr.msk.bf16.gmra.mrb[4].mxu0 %vm568_vm3, %v2288_v53 }
  0x67   : > { %2551 = vmatmul.mubr.msk.bf16.gmra.mrb[12].mxu1 %vm568_vm3, %v2290_v42  ;;  %2636 = vmatprep.mubr.msk.bf16.mxu0 %vm568_vm3, %v2289_v21 }
  0x68   : > { %2556 = vmatprep.mubr.msk.bf16.mxu1 %vm568_vm3, %v2310_v36 }
  0x6e   : > { %2637 = vmatmul.mubr.msk.bf16.gmra.mrb[8].mxu0 %vm568_vm3, %v2290_v42 }
  0x6f   : > { %2557 = vmatmul.mubr.msk.bf16.vlgmr.msra.gmra.mrb[0].mxu1 %vm568_vm3, %v3181_v34  ;;  %2640 = vmatprep.mubr.msk.bf16.mxu0 %vm568_vm3, %v2329_v48  ;;  %v1228_v34 = vshll.u32 %v3315_v51, 16  ;;  %v1241_v51 = vor.u32 %v1240_v25, %v1236_v19 }
  0x70   : > { %2573 = vmatpush3.bf16.msra.mxu1 %v2868_v13  ;;  %2560 = vmatprep.mubr.msk.bf16.mxu1 %vm568_vm3, %v3218_v57  ;;  %v1246_v13 = vrot.slane %v1244_v2, 5 }
  0x71   : > { %2680 = vmatprep.subr.bf16.mxu1 %v2980_v1  ;;  %v1230_v24 = vrot.slane %v1228_v34, 5  ;;  %v1242_v11 = vrot.slane %v1241_v51, 4 }
  0x76   : > { %2641 = vmatmul.mubr.msk.bf16.gmra.mrb[12].mxu0 %vm568_vm3, %v2366_v23 }
  0x77   : > { %2561 = vmatmul.mubr.msk.bf16.gmra.mrb[4].mxu1 %vm568_vm3, %v3261_v49  ;;  %2646 = vmatprep.mubr.msk.bf16.mxu0 %vm568_vm3, %v3114_v43  ;;  %v1231_v43 = vor.u32 %v1230_v24, %v1227_v14 }
  0x78   : > { %2564 = vmatprep.mubr.msk.bf16.mxu1 %vm568_vm3, %v3298_v37 }
  0x79   : > { %v1232_v29 = vrot.slane %v1231_v43, 4 }
  0x7e   : > { %2647 = vmatmul.mubr.msk.bf16.vlgmr.msra.gmra.mrb[0].mxu0 %vm568_vm3, %v3148_v12  ;;  %v1237_v12 = vsel %vm3043_vm2, %v1232_v29, %v1236_v19 }
  0x7f   : > { %2565 = vmatmul.mubr.msk.bf16.gmra.mrb[8].mxu1 %vm568_vm3, %v3308_v45  ;;  %2663 = vmatpush3.bf16.msra.mxu0 %v2871_v5 }
  0x80   : > { %2568 = vmatprep.mubr.msk.bf16.mxu1 %vm568_vm3, %v3337_v9  ;;  %2650 = vmatprep.mubr.msk.bf16.mxu0 %vm568_vm3, %v3179_v33  ;;  %v1247_v33 = vsel %vm3043_vm2, %v1242_v11, %v1246_v13 }
  0x81   : > { %v2341_v39 = vcombine.low %v1237_v12, %v1247_v33 }
  0x86   : > { %2651 = vmatmul.mubr.msk.bf16.gmra.mrb[4].mxu0 %vm568_vm3, %v3235_v26 }
  0x87   : > { %2569 = vmatmul.mubr.msk.bf16.gmra.mrb[12].mxu1 %vm568_vm3, %v3348_v3  ;;  %2654 = vmatprep.mubr.msk.bf16.mxu0 %vm568_vm3, %v3264_v58 }
  0x88   : > { %2574 = vmatprep.mubr.msk.bf16.mxu1 %vm568_vm3, %v3346_v6 }
  0x8e   : > { %2655 = vmatmul.mubr.msk.bf16.gmra.mrb[8].mxu0 %vm568_vm3, %v3306_v41 }
  0x8f   : > { %2575 = vmatmul.mubr.msk.bf16.vlgmr.msra.gmra.mrb[0].mxu1 %vm568_vm3, %v3357_v8  ;;  %2658 = vmatprep.mubr.msk.bf16.mxu0 %vm568_vm3, %v2341_v39 }
  0x90   : > { %2681 = vmatpush3.bf16.msra.mxu1 %v2980_v1  ;;  %2578 = vmatprep.mubr.msk.bf16.mxu1 %vm568_vm3, %v3388_v15 }
  0x96   : > { %2659 = vmatmul.mubr.msk.bf16.gmra.mrb[12].mxu0 %vm568_vm3, %v2378_v20 }
  0x97   : > { %2579 = vmatmul.mubr.msk.bf16.gmra.mrb[4].mxu1 %vm568_vm3, %v3392_v59  ;;  %2664 = vmatprep.mubr.msk.bf16.mxu0 %vm568_vm3, %v3218_v57 }
  0x98   : > { %2582 = vmatprep.mubr.msk.bf16.mxu1 %vm568_vm3, %v2288_v53 }
  0x9e   : > { %2665 = vmatmul.mubr.msk.bf16.vlgmr.msra.gmra.mrb[0].mxu0 %vm568_vm3, %v3261_v49 }
  0x9f   : > { %2583 = vmatmul.mubr.msk.bf16.gmra.mrb[8].mxu1 %vm568_vm3, %v2289_v21  ;;  %2668 = vmatprep.mubr.msk.bf16.mxu0 %vm568_vm3, %v3298_v37 }
  0xa0   : > { %2586 = vmatprep.mubr.msk.bf16.mxu1 %vm568_vm3, %v2290_v42 }
  0xa6   : > { %2669 = vmatmul.mubr.msk.bf16.gmra.mrb[4].mxu0 %vm568_vm3, %v3308_v45 }
  0xa7   : > { %2587 = vmatmul.mubr.msk.bf16.gmra.mrb[12].mxu1 %vm568_vm3, %v2329_v48  ;;  %2672 = vmatprep.mubr.msk.bf16.mxu0 %vm568_vm3, %v3337_v9 }
  0xa8   : > { %2600 = vmatprep.mubr.msk.bf16.mxu1 %vm568_vm3, %v3235_v26 }
  0xae   : > { %2673 = vmatmul.mubr.msk.bf16.gmra.mrb[8].mxu0 %vm568_vm3, %v3348_v3 }
  0xaf   : > { %2601 = vmatmul.mubr.msk.bf16.vlgmr.msra.gmra.mrb[8].mxu1 %vm568_vm3, %v3264_v58  ;;  %2676 = vmatprep.mubr.msk.bf16.mxu0 %vm568_vm3, %v3382_v44 }
  0xb0   : > { %2604 = vmatprep.mubr.msk.bf16.mxu1 %vm568_vm3, %v3306_v41 }
  0xb6   : > { %2677 = vmatmul.mubr.msk.bf16.gmra.mrb[12].mxu0 %vm568_vm3, %v2391_v55 }
  0xb7   : > { %2605 = vmatmul.mubr.msk.bf16.gmra.mrb[12].mxu1 %vm568_vm3, %v2341_v39 }
 0x162   : > { %v2576_v1 = vpop.f32.mrb[0].mxu1 }
 0x163   : > { %v1145_v28 = vpop.f32.mrb[1].mxu1 }
 0x164   : > { %v2577_v57 = vpop.f32.mrb[2].mxu1 }
 0x165   : > { %v1148_v26 = vpop.f32.mrb[3].mxu1 }
 0x16a   : > { %v2580_v49 = vpop.f32.mrb[4].mxu1 }
 0x16b   : > { %v1161_v58 = vpop.f32.mrb[5].mxu1 }
 0x16c   : > { %v2581_v37 = vpop.f32.mrb[6].mxu1 }
 0x16d   : > { %v1164_v41 = vpop.f32.mrb[7].mxu1 }
 0x171   : > { %v2666_v45 = vpop.f32.mrb[0].mxu0 }
 0x172   : > { %v2682_v9 = vadd.f32 %v2666_v45, %v2576_v1  ;;  %v1851_v6 = vpop.f32.mrb[1].mxu0 }
 0x173   : > { %v2683_v3 = vadd.f32 %v1851_v6, %v1145_v28  ;;  %v2667_v8 = vpop.f32.mrb[2].mxu0 }
 0x174   : > { %v2423_v27 = vpack.c.bf16 %v2682_v9, %v2682_v9  ;;  %v2684_v32 = vadd.f32 %v2667_v8, %v2577_v57  ;;  %v1854_v60 = vpop.f32.mrb[3].mxu0  ;;  %v2053_v38 = vmul.f32 %v2682_v9, %v2682_v9  ;;  %v2015_v62 = vsel %vm2011_vm8, %v2682_v9, 0.0 }
 0x175   : > { %v2421_v30 = vpack.c.bf16 %v2683_v3, %v2683_v3  ;;  %v2051_v35 = vmul.f32 %v2683_v3, %v2683_v3  ;;  %v2685_v36 = vadd.f32 %v1854_v60, %v1148_v26  ;;  %v2012_v46 = vsel %vm2011_vm8, %v2683_v3, 0.0 }
 0x176   : > { %1997 = vst.msk [vmem:[%s3527_s15 + $0x8] sm:$0xf] %vm1994_vm7, %v2423_v27  ;;  %v2424_v40 = vpack.c.bf16 %v2684_v32, %v2684_v32  ;;  %v2054_v61 = vmul.f32 %v2684_v32, %v2684_v32  ;;  %v2070_v18 = vsel %vm2011_vm8, %v2053_v38, 0.0  ;;  %v2017_v55 = vsel %vm2011_vm8, %v2684_v32, 0.0 }
 0x177   : > { %1995 = vst.msk [vmem:[%s3527_s15] sm:$0xf] %vm1994_vm7, %v2421_v30  ;;  %v2422_v44 = vpack.c.bf16 %v2685_v36, %v2685_v36  ;;  %v2013_v52 = vsel %vm2011_vm8, %v2685_v36, 0.0  ;;  %v2052_v56 = vmul.f32 %v2685_v36, %v2685_v36  ;;  %v2067_v63 = vsel %vm2011_vm8, %v2051_v35, 0.0 }
 0x178   : > { %1998 = vst.msk [vmem:[%s3527_s15 + $0xc] sm:$0xf] %vm1994_vm7, %v2424_v40  ;;  %v2014_v22 = vadd.f32 %v2013_v52, %v2012_v46  ;;  %v2072_v7 = vsel %vm2011_vm8, %v2054_v61, 0.0 }
 0x179   : > { %1996 = vst.msk [vmem:[%s3527_s15 + $0x4] sm:$0xf] %vm1994_vm7, %v2422_v44  ;;  %v2068_v15 = vsel %vm2011_vm8, %v2052_v56, 0.0  ;;  %v2670_v59 = vpop.f32.mrb[4].mxu0 }
 0x17a   : > { %v2016_v47 = vadd.f32 %v2015_v62, %v2014_v22  ;;  %v2069_v0 = vadd.f32 %v2068_v15, %v2067_v63  ;;  %v2686_v10 = vadd.f32 %v2670_v59, %v2580_v49  ;;  %v1867_v16 = vpop.f32.mrb[5].mxu0 }
 0x17b   : > { %v2687_v4 = vadd.f32 %v1867_v16, %v1161_v58  ;;  %v2671_v50 = vpop.f32.mrb[6].mxu0 }
 0x17c   : > { %v2071_v20 = vadd.f32 %v2070_v18, %v2069_v0  ;;  %v2427_v53 = vpack.c.bf16 %v2686_v10, %v2686_v10  ;;  %v1870_v21 = vpop.f32.mrb[7].mxu0  ;;  %v2018_v42 = vadd.f32 %v2017_v55, %v2016_v47  ;;  %v2688_v34 = vadd.f32 %v2671_v50, %v2581_v37 }
 0x17d   : > { %v2425_v5 = vpack.c.bf16 %v2687_v4, %v2687_v4  ;;  %v2019_v48 = vsel %vm2011_vm8, %v2687_v4, 0.0  ;;  %v2055_v23 = vmul.f32 %v2687_v4, %v2687_v4  ;;  %v2689_v54 = vadd.f32 %v1870_v21, %v1164_v41 }
 0x17e   : > { %2001 = vst.msk [vmem:[%s3527_s15 + $0x18] sm:$0xf] %vm1994_vm7, %v2427_v53  ;;  %v2073_v31 = vadd.f32 %v2072_v7, %v2071_v20  ;;  %v2020_v17 = vadd.f32 %v2019_v48, %v2018_v42  ;;  %v2428_v19 = vpack.c.bf16 %v2688_v34, %v2688_v34  ;;  %v2057_v25 = vmul.f32 %v2686_v10, %v2686_v10 }
 0x17f   : > { %1999 = vst.msk [vmem:[%s3527_s15 + $0x10] sm:$0xf] %vm1994_vm7, %v2425_v5  ;;  %v2074_v14 = vsel %vm2011_vm8, %v2055_v23, 0.0  ;;  %v2426_v43 = vpack.c.bf16 %v2689_v54, %v2689_v54  ;;  %v2021_v51 = vsel %vm2011_vm8, %v2689_v54, 0.0  ;;  %v2056_v2 = vmul.f32 %v2689_v54, %v2689_v54 }
 0x180   : > { %v2075_v24 = vadd.f32 %v2074_v14, %v2073_v31  ;;  %2002 = vst.msk [vmem:[%s3527_s15 + $0x1c] sm:$0xf] %vm1994_vm7, %v2428_v19  ;;  %v2022_v11 = vadd.f32 %v2021_v51, %v2020_v17  ;;  %v2023_v33 = vsel %vm2011_vm8, %v2686_v10, 0.0  ;;  %v2058_v39 = vmul.f32 %v2688_v34, %v2688_v34 }
 0x181   : > { %v2674_v29 = vpop.f32.mrb[8].mxu0  ;;  %2000 = vst.msk [vmem:[%s3527_s15 + $0x14] sm:$0xf] %vm1994_vm7, %v2426_v43  ;;  %v2076_v1 = vsel %vm2011_vm8, %v2056_v2, 0.0  ;;  %v2078_v9 = vsel %vm2011_vm8, %v2057_v25, 0.0  ;;  %v2025_v6 = vsel %vm2011_vm8, %v2688_v34, 0.0 }
 0x182   : > { %v2602_v13 = vpop.f32.mrb[8].mxu1  ;;  %v1883_v12 = vpop.f32.mrb[9].mxu0  ;;  %v2024_v49 = vadd.f32 %v2023_v33, %v2022_v11  ;;  %v2077_v58 = vadd.f32 %v2076_v1, %v2075_v24  ;;  %v2080_v36 = vsel %vm2011_vm8, %v2058_v39, 0.0 }
 0x183   : > { %v2690_v28 = vadd.f32 %v2674_v29, %v2602_v13  ;;  %v1329_v57 = vpop.f32.mrb[9].mxu1  ;;  %v2675_v26 = vpop.f32.mrb[10].mxu0 }
 0x184   : > { %v2691_v37 = vadd.f32 %v1883_v12, %v1329_v57  ;;  %v2603_v41 = vpop.f32.mrb[10].mxu1  ;;  %v1886_v45 = vpop.f32.mrb[11].mxu0  ;;  %v2079_v32 = vadd.f32 %v2078_v9, %v2077_v58  ;;  %v2026_v30 = vadd.f32 %v2025_v6, %v2024_v49 }
 0x185   : > { %v2431_v3 = vpack.c.bf16 %v2690_v28, %v2690_v28  ;;  %v2692_v8 = vadd.f32 %v2675_v26, %v2603_v41  ;;  %v1332_v27 = vpop.f32.mrb[11].mxu1  ;;  %v2061_v46 = vmul.f32 %v2690_v28, %v2690_v28  ;;  %v2031_v50 = vsel %vm2011_vm8, %v2690_v28, 0.0 }
 0x186   : > { %v2429_v60 = vpack.c.bf16 %v2691_v37, %v2691_v37  ;;  %v2027_v35 = vsel %vm2011_vm8, %v2691_v37, 0.0  ;;  %v2059_v38 = vmul.f32 %v2691_v37, %v2691_v37  ;;  %v2081_v52 = vadd.f32 %v2080_v36, %v2079_v32 }
 0x187   : > { %2005 = vst.msk [vmem:[%s3527_s15 + $0x28] sm:$0xf] %vm1994_vm7, %v2431_v3  ;;  %v2432_v40 = vpack.c.bf16 %v2692_v8, %v2692_v8  ;;  %v2028_v44 = vadd.f32 %v2027_v35, %v2026_v30  ;;  %v2693_v56 = vadd.f32 %v1886_v45, %v1332_v27  ;;  %v2086_v55 = vsel %vm2011_vm8, %v2061_v46, 0.0 }
 0x188   : > { %2003 = vst.msk [vmem:[%s3527_s15 + $0x20] sm:$0xf] %vm1994_vm7, %v2429_v60  ;;  %v2082_v61 = vsel %vm2011_vm8, %v2059_v38, 0.0  ;;  %v2062_v21 = vmul.f32 %v2692_v8, %v2692_v8  ;;  %v2033_v31 = vsel %vm2011_vm8, %v2692_v8, 0.0 }
 0x189   : > { %2006 = vst.msk [vmem:[%s3527_s15 + $0x2c] sm:$0xf] %vm1994_vm7, %v2432_v40  ;;  %v2678_v22 = vpop.f32.mrb[12].mxu0  ;;  %v2083_v62 = vadd.f32 %v2082_v61, %v2081_v52  ;;  %v2430_v63 = vpack.c.bf16 %v2693_v56, %v2693_v56  ;;  %v2029_v15 = vsel %vm2011_vm8, %v2693_v56, 0.0  ;;  %v2060_v10 = vmul.f32 %v2693_v56, %v2693_v56 }
 0x18a   : > { %v2606_v59 = vpop.f32.mrb[12].mxu1  ;;  %v1899_v47 = vpop.f32.mrb[13].mxu0  ;;  %v2030_v0 = vadd.f32 %v2029_v15, %v2028_v44  ;;  %v2088_v51 = vsel %vm2011_vm8, %v2062_v21, 0.0 }
 0x18b   : > { %v2694_v16 = vadd.f32 %v2678_v22, %v2606_v59  ;;  %v1345_v18 = vpop.f32.mrb[13].mxu1  ;;  %v2679_v4 = vpop.f32.mrb[14].mxu0  ;;  %2004 = vst.msk [vmem:[%s3527_s15 + $0x24] sm:$0xf] %vm1994_vm7, %v2430_v63  ;;  %v2084_v42 = vsel %vm2011_vm8, %v2060_v10, 0.0 }
 0x18c   : > { %v2695_v7 = vadd.f32 %v1899_v47, %v1345_v18  ;;  %v2607_v20 = vpop.f32.mrb[14].mxu1  ;;  %v1902_v53 = vpop.f32.mrb[15].mxu0  ;;  %v2032_v5 = vadd.f32 %v2031_v50, %v2030_v0  ;;  %v2085_v34 = vadd.f32 %v2084_v42, %v2083_v62 }
 0x18d   : > { %v2435_v48 = vpack.c.bf16 %v2694_v16, %v2694_v16  ;;  %v1348_v23 = vpop.f32.mrb[15].mxu1  ;;  %v2696_v19 = vadd.f32 %v2679_v4, %v2607_v20  ;;  %v2065_v39 = vmul.f32 %v2694_v16, %v2694_v16  ;;  %v2039_v57 = vsel %vm2011_vm8, %v2694_v16, 0.0 }
 0x18e   : > { %v2433_v54 = vpack.c.bf16 %v2695_v7, %v2695_v7  ;;  %v2035_v17 = vsel %vm2011_vm8, %v2695_v7, 0.0  ;;  %v2034_v14 = vadd.f32 %v2033_v31, %v2032_v5  ;;  %v2063_v24 = vmul.f32 %v2695_v7, %v2695_v7 }
 0x18f   : > { %2009 = vst.msk [vmem:[%s3527_s15 + $0x38] sm:$0xf] %vm1994_vm7, %v2435_v48  ;;  %v2697_v25 = vadd.f32 %v1902_v53, %v1348_v23  ;;  %v2087_v43 = vadd.f32 %v2086_v55, %v2085_v34  ;;  %v2436_v11 = vpack.c.bf16 %v2696_v19, %v2696_v19  ;;  %v2066_v49 = vmul.f32 %v2696_v19, %v2696_v19 }
 0x190   : > { %2007 = vst.msk [vmem:[%s3527_s15 + $0x30] sm:$0xf] %vm1994_vm7, %v2433_v54  ;;  %v2036_v2 = vadd.f32 %v2035_v17, %v2034_v14  ;;  %v2090_v29 = vsel %vm2011_vm8, %v2063_v24, 0.0  ;;  %v2041_v41 = vsel %vm2011_vm8, %v2696_v19, 0.0  ;;  %v2094_v9 = vsel %vm2011_vm8, %v2065_v39, 0.0 }
 0x191   : > { %v2089_v13 = vadd.f32 %v2088_v51, %v2087_v43  ;;  %v2434_v12 = vpack.c.bf16 %v2697_v25, %v2697_v25  ;;  %v2037_v33 = vsel %vm2011_vm8, %v2697_v25, 0.0  ;;  %2010 = vst.msk [vmem:[%s3527_s15 + $0x3c] sm:$0xf] %vm1994_vm7, %v2436_v11  ;;  %v2064_v28 = vmul.f32 %v2697_v25, %v2697_v25 }
 0x192   : > { %v2038_v1 = vadd.f32 %v2037_v33, %v2036_v2  ;;  %v2096_v8 = vsel %vm2011_vm8, %v2066_v49, 0.0 }
 0x193   : > { %v2091_v26 = vadd.f32 %v2090_v29, %v2089_v13  ;;  %2008 = vst.msk [vmem:[%s3527_s15 + $0x34] sm:$0xf] %vm1994_vm7, %v2434_v12  ;;  %v2092_v37 = vsel %vm2011_vm8, %v2064_v28, 0.0 }
 0x194   : > { %v2040_v58 = vadd.f32 %v2039_v57, %v2038_v1 }
 0x195   : > { %v2093_v45 = vadd.f32 %v2092_v37, %v2091_v26 }
 0x196   : > { %v2042_v6 = vadd.f32 %v2041_v41, %v2040_v58 }
 0x197   : > { %v2095_v3 = vadd.f32 %v2094_v9, %v2093_v45 }
 0x198   : > { %v2043_v27 = vrot.slane %v2042_v6, 4 }
 0x199   : > { %v2097_v32 = vadd.f32 %v2096_v8, %v2095_v3 }
 0x19a   : > { %v2044_v60 = vadd.f32 %v2043_v27, %v2042_v6 }
 0x19b   : > { %v2098_v30 = vrot.slane %v2097_v32, 4 }
 0x19c   : > { %v2045_v35 = vrot.slane %v2044_v60, 2 }
 0x19d   : > { %v2099_v36 = vadd.f32 %v2098_v30, %v2097_v32 }
 0x19e   : > { %v2046_v38 = vadd.f32 %v2045_v35, %v2044_v60 }
 0x19f   : > { %v2100_v40 = vrot.slane %v2099_v36, 2 }
 0x1a0   : > { %v2047_v46 = vrot.slane %v2046_v38, 1 }
 0x1a1   : > { %v2101_v44 = vadd.f32 %v2100_v40, %v2099_v36 }
 0x1a2   : > { %v2048_v52 = vadd.f32 %v2047_v46, %v2046_v38 }
 0x1a3   : > { %v2102_v56 = vrot.slane %v2101_v44, 1 }
 0x1a4   : > { %2050 = vst.msk [vmem:[%s304_s29] sm:$0x1] %vm2049_vm9, %v2048_v52 }
 0x1a5   : > { %v2103_v61 = vadd.f32 %v2102_v56, %v2101_v44 }
 0x1a7   : > { %2104 = vst.msk [vmem:[%s304_s29 + $0x1] sm:$0x1] %vm2049_vm9, %v2103_v61 }
 0x1a8 PF: > { %s15_s19 = sadd.s32 1, %s2910_s19   ;;  %s3623_s15 = smov %s2902_s17 }
 0x1a9   : > { %p12_p10 = scmp.ge.s32.totalorder %s15_s19, 6   ;;  %s3624_s16 = smov %s2906_s18 }
 0x1aa   : > { %s3625_s17 = smov %s3628_s20  ;;  %s3626_s18 = smov %s3632_s21 }
 0x1ab   :  { %14 = sbr.rel (!%p12_p10) target bundleno = 3 (0x3), region = 85 }

</bundles_post_ra>
